<compile_context>
chip_gen: v5e
topology: v5e:2x2
jax: 0.10.0
libtpu: 0.0.40
codegen_flags: <defaults>
</compile_context>

<pallas_src>
import math
from functools import partial

import jax
import jax.numpy as jnp
from jax.experimental import pallas as pl
from jax.experimental.pallas import tpu as pltpu


def _adaptive_windows(in_size, out_size):
    """Static AdaptiveMaxPool1d windows [start, end) per output index
    (same formula as PyTorch: floor(i*I/O) .. ceil((i+1)*I/O))."""
    wins = []
    for i in range(out_size):
        s = (i * in_size) // out_size
        e = ((i + 1) * in_size + out_size - 1) // out_size
        wins.append((s, e))
    return wins


def make_nhits_stack_kernel(B_tile, H, F, pooled, n_blocks, n_layers, out_size):
    """Build the fused NhitsStack kernel body for static shapes.

    Expects prepared (kernel-layout) weights: per block
      [Wt_0 (in,hid), b_0 (1,hid), ..., Wt_{L-1}, b_{L-1},
       W_h1 (hid, 2*theta), b_h1 (1, 2*theta),
       W_h2 (2*theta, H*F + out), b_h2 (1, H*F + out)]
    """
    per_block = 2 * n_layers + 4
    n_w = n_blocks * per_block
    use_pool = H > 2
    orig_in = H * F

    if use_pool:
        windows = _adaptive_windows(H, pooled)
        sizes = {e - s for (s, e) in windows}
        uniform = (len(sizes) == 1
                   and all(windows[i][0] == i for i in range(pooled)))
        win_len = next(iter(sizes)) if uniform else None
    else:
        windows, uniform, win_len = None, False, None

    def linear(v, w, b):
        # (B, K) @ (K, N) + (1, N); accumulate in f32 on the MXU.
        return jnp.dot(v, w, preferred_element_type=jnp.float32) + b

    def kernel(x_ref, *refs):
        w_refs = refs[:n_w]
        backcast_ref = refs[n_w]
        forecast_ref = refs[n_w + 1]

        backcast = x_ref[...]                                 # (B, H*F)
        forecast = jnp.zeros((B_tile, out_size), jnp.float32)

        for nb in range(n_blocks):
            blk = [w_refs[nb * per_block + t][...] for t in range(per_block)]

            # --- AdaptiveMaxPool1d along the history axis, all in vregs.
            if use_pool:
                if uniform:
                    # every window is [i, i + win_len): one shifted-slab max.
                    h = backcast[:, :pooled * F]
                    for k in range(1, win_len):
                        h = jnp.maximum(h, backcast[:, k * F:(pooled + k) * F])
                else:
                    chunks = []
                    for (s, e) in windows:
                        win = backcast[:, s * F:(s + 1) * F]
                        for j in range(s + 1, e):
                            win = jnp.maximum(win,
                                              backcast[:, j * F:(j + 1) * F])
                        chunks.append(win)
                    h = jnp.concatenate(chunks, axis=1)
            else:
                h = backcast                                   # (B, H*F)

            # --- MLP trunk: [Linear -> ReLU -> Dropout] * n_layers
            # TODO(synk): training-mode dropout (stochastic masking) is not
            # implemented; nn.Dropout is identity at inference.
            for l in range(n_layers):
                h = jnp.maximum(linear(h, blk[2 * l], blk[2 * l + 1]), 0.0)

            off = 2 * n_layers
            # --- Fused heads: one (hid, 2*theta) matmul, then one
            # block-diagonal (2*theta, H*F + out) matmul; slice bc / fc.
            t = linear(h, blk[off + 0], blk[off + 1])          # (B, 2*theta)
            y = linear(t, blk[off + 2], blk[off + 3])          # (B, H*F+out)

            backcast = backcast - y[:, :orig_in]
            forecast = forecast + y[:, orig_in:]

        backcast_ref[...] = backcast                           # lane-dense
        forecast_ref[...] = forecast

    return kernel


@partial(jax.jit, static_argnames=("batch_tile",))
def nhits_stack_forward(x, prepared, batch_tile=None):
    """NhitsStack forward.

    x        : (B, n_hist, n_feat) float32
    prepared : output of prepare_params() (kernel-layout weights).
    batch_tile: optional rows-per-tile; if set and < B, the batch is tiled
                on a 1-D "parallel" grid (useful for large B / v7x 2 TCs).
    Returns (backcast, combined_forecast) like the PyTorch module.
    """
    B, H, F = x.shape
    n_blocks = len(prepared)
    per_block = len(prepared[0])
    n_layers = (per_block - 4) // 2
    orig_in = H * F

    w_h2 = prepared[0][2 * n_layers + 2]
    out_size = w_h2.shape[1] - orig_in
    new_in = prepared[0][0].shape[0]
    if H > 2:
        assert new_in % F == 0, "first-layer in-dim must be pooled * n_feat"
        pooled = new_in // F
        assert 0 < pooled <= H, "pooled size out of range"
    else:
        pooled = H
        assert new_in == H * F, "first-layer in-dim must be n_hist * n_feat"

    x2d = x.reshape(B, orig_in).astype(jnp.float32)
    flat_w = [w for blk in prepared for w in blk]

    out_shape = (jax.ShapeDtypeStruct((B, orig_in), jnp.float32),
                 jax.ShapeDtypeStruct((B, out_size), jnp.float32))

    if batch_tile is None or batch_tile >= B:
        # Tiny-batch path: single invocation, everything a full VMEM block.
        kernel = make_nhits_stack_kernel(B, H, F, pooled, n_blocks, n_layers,
                                         out_size)
        backcast2d, forecast = pl.pallas_call(
            kernel,
            out_shape=out_shape,
            in_specs=[pl.BlockSpec(memory_space=pltpu.MemorySpace.VMEM)
                      for _ in range(1 + len(flat_w))],
            out_specs=(pl.BlockSpec(memory_space=pltpu.MemorySpace.VMEM),
                       pl.BlockSpec(memory_space=pltpu.MemorySpace.VMEM)),
        )(x2d, *flat_w)
    else:
        # Large-batch path: tile rows; weights stay VMEM-resident (block 0
        # every step); batch axis is "parallel" (megacore / v7x 2 TCs).
        TB = batch_tile
        assert B % TB == 0, "batch_tile must divide the batch"
        kernel = make_nhits_stack_kernel(TB, H, F, pooled, n_blocks, n_layers,
                                         out_size)
        w_specs = [pl.BlockSpec(w.shape, lambda i: (0, 0)) for w in flat_w]
        backcast2d, forecast = pl.pallas_call(
            kernel,
            out_shape=out_shape,
            grid=(B // TB,),
            in_specs=[pl.BlockSpec((TB, orig_in), lambda i: (i, 0))] + w_specs,
            out_specs=(pl.BlockSpec((TB, orig_in), lambda i: (i, 0)),
                       pl.BlockSpec((TB, out_size), lambda i: (i, 0))),
            compiler_params=pltpu.CompilerParams(
                dimension_semantics=("parallel",)),
        )(x2d, *flat_w)

    return backcast2d.reshape(B, H, F), forecast


# ----------------------------------------------------------------------------
# Parameter construction (PyTorch layout) + one-time kernel-layout preparation.
# ----------------------------------------------------------------------------

def _linear_init(key, out_dim, in_dim):
    """torch.nn.Linear default init (Kaiming-uniform, bound 1/sqrt(fan_in))."""
    kw, kb = jax.random.split(key)
    bound = 1.0 / math.sqrt(in_dim)
    w = jax.random.uniform(kw, (out_dim, in_dim), jnp.float32, -bound, bound)
    b = jax.random.uniform(kb, (out_dim,), jnp.float32, -bound, bound)
    return w, b


def init_nhits_stack_params(key, input_size, hidden_size, theta, n_layers,
                            n_blocks, m_pool_k, output_size):
    """PyTorch-layout params: per block
       [W_0, b_0, ..., W_{L-1}, b_{L-1},
        W_bc1, b_bc1, W_bc2, b_bc2, W_fc1, b_fc1, W_fc2, b_fc2]
       with W in (out_features, in_features) layout, b in (out_features,)."""
    n_hist, n_feat = input_size
    orig_in = n_hist * n_feat
    pooled = n_hist - m_pool_k
    new_in = pooled * n_feat
    params = []
    for kb in jax.random.split(key, n_blocks):
        ks = jax.random.split(kb, n_layers + 4)
        blk = []
        w, b = _linear_init(ks[0], hidden_size, new_in)
        blk += [w, b]
        for l in range(1, n_layers):
            w, b = _linear_init(ks[l], hidden_size, hidden_size)
            blk += [w, b]
        w, b = _linear_init(ks[n_layers + 0], theta, hidden_size); blk += [w, b]
        w, b = _linear_init(ks[n_layers + 1], orig_in, theta);     blk += [w, b]
        w, b = _linear_init(ks[n_layers + 2], theta, hidden_size); blk += [w, b]
        w, b = _linear_init(ks[n_layers + 3], output_size, theta); blk += [w, b]
        params.append(blk)
    return params


def prepare_params(params):
    """ONE-TIME (outside jit) preprocessing into kernel layout:
       * transpose every Linear weight to (in, out),
       * fuse the two theta heads into one (hidden, 2*theta) weight,
       * fuse the two projection heads into one block-diagonal
         (2*theta, H*F + out_size) weight,
       * reshape biases to (1, out)."""
    prepared = []
    for blk in params:
        per = len(blk)
        n_layers = per // 2 - 4
        new = []
        for l in range(n_layers):
            w, b = blk[2 * l], blk[2 * l + 1]
            new += [jnp.asarray(w.T, jnp.float32),
                    jnp.asarray(b, jnp.float32).reshape(1, -1)]
        off = 2 * n_layers
        w_bc1, b_bc1, w_bc2, b_bc2 = blk[off:off + 4]
        w_fc1, b_fc1, w_fc2, b_fc2 = blk[off + 4:off + 8]
        theta = w_bc1.shape[0]
        orig_in = w_bc2.shape[0]
        out_size = w_fc2.shape[0]

        w_h1 = jnp.concatenate([w_bc1.T, w_fc1.T], axis=1)     # (hid, 2*theta)
        b_h1 = jnp.concatenate([b_bc1, b_fc1]).reshape(1, -1)

        w_h2 = jnp.zeros((2 * theta, orig_in + out_size), jnp.float32)
        w_h2 = w_h2.at[:theta, :orig_in].set(w_bc2.T)
        w_h2 = w_h2.at[theta:, orig_in:].set(w_fc2.T)
        b_h2 = jnp.concatenate([b_bc2, b_fc2]).reshape(1, -1)

        new += [jnp.asarray(w_h1, jnp.float32), b_h1,
                jnp.asarray(w_h2, jnp.float32), b_h2]
        prepared.append(new)
    return prepared


# ----------------------------------------------------------------------------
# Pure-JAX reference (PyTorch layout / PyTorch math).
# ----------------------------------------------------------------------------

def ref_nhits_stack(x, params):
    B, H, F = x.shape
    per_block = len(params[0])
    n_layers = per_block // 2 - 4
    out_size = params[0][-2].shape[0]
    pooled = (params[0][0].shape[1] // F) if H > 2 else H

    backcast2d = x.reshape(B, H * F).astype(jnp.float32)
    forecast = jnp.zeros((B, out_size), jnp.float32)
    for blk in params:
        if H > 2:
            xr = backcast2d.reshape(B, H, F)
            chunks = [jnp.max(xr[:, s:e, :], axis=1)
                      for (s, e) in _adaptive_windows(H, pooled)]
            h = jnp.concatenate(chunks, axis=1)
        else:
            h = backcast2d
        for l in range(n_layers):
            h = jnp.maximum(h @ blk[2 * l].T + blk[2 * l + 1], 0.0)
        off = 2 * n_layers
        bc = (h @ blk[off + 0].T + blk[off + 1]) @ blk[off + 2].T + blk[off + 3]
        fc = (h @ blk[off + 4].T + blk[off + 5]) @ blk[off + 6].T + blk[off + 7]
        backcast2d = backcast2d - bc
        forecast = forecast + fc
    return backcast2d.reshape(B, H, F), forecast


if __name__ == "__main__":
    # f32-accurate matmuls everywhere so the check is about structure,
    # not default-precision wobble.
    jax.config.update("jax_default_matmul_precision", "highest")

    key = jax.random.PRNGKey(0)
    k_x, k_x2, k_p = jax.random.split(key, 3)

    # Small shapes consistent with the module: x is (batch, n_hist, n_feat).
    B = 2
    input_size = (8, 16)        # n_hist=8, n_feat=16 -> orig_in=128 (lane dense)
    hidden_size = 32
    theta = 20
    n_layers = 2
    n_blocks = 2
    m_pool_k = 1                # pooled = 7, new_in = 112
    output_size = 1

    params = init_nhits_stack_params(k_p, input_size, hidden_size, theta,
                                     n_layers, n_blocks, m_pool_k, output_size)
    prepared = prepare_params(params)   # one-time, outside jit

    # --- tiny-batch path (no grid) -------------------------------------
    x = jax.random.normal(k_x, (B,) + input_size, dtype=jnp.float32)
    backcast, forecast = nhits_stack_forward(x, prepared)
    backcast, forecast = jax.block_until_ready((backcast, forecast))

    ref_bc, ref_fc = ref_nhits_stack(x, params)
    assert backcast.shape == (B,) + input_size, backcast.shape
    assert forecast.shape == (B, output_size), forecast.shape
    assert jnp.allclose(backcast, ref_bc, atol=1e-3, rtol=1e-3), "backcast mismatch"
    assert jnp.allclose(forecast, ref_fc, atol=1e-3, rtol=1e-3), "forecast mismatch"

    # --- batch-grid ("parallel") path, exercised at a modest B ----------
    # (perf-relevant only for large B / v7x 2 TCs; run here for correctness)
    B2 = 16
    x2 = jax.random.normal(k_x2, (B2,) + input_size, dtype=jnp.float32)
    backcast2, forecast2 = nhits_stack_forward(x2, prepared, batch_tile=8)
    backcast2, forecast2 = jax.block_until_ready((backcast2, forecast2))

    ref_bc2, ref_fc2 = ref_nhits_stack(x2, params)
    assert jnp.allclose(backcast2, ref_bc2, atol=1e-3, rtol=1e-3), "grid backcast mismatch"
    assert jnp.allclose(forecast2, ref_fc2, atol=1e-3, rtol=1e-3), "grid forecast mismatch"

    print("KERNEL_OK")
</pallas_src>

<mosaic_0001>
module attributes {stable_mosaic.version = 11 : i64} {
  func.func @kernel(%arg0: memref<2x128xf32, #tpu.memory_space<vmem>>, %arg1: memref<112x32xf32, #tpu.memory_space<vmem>>, %arg2: memref<1x32xf32, #tpu.memory_space<vmem>>, %arg3: memref<32x32xf32, #tpu.memory_space<vmem>>, %arg4: memref<1x32xf32, #tpu.memory_space<vmem>>, %arg5: memref<32x40xf32, #tpu.memory_space<vmem>>, %arg6: memref<1x40xf32, #tpu.memory_space<vmem>>, %arg7: memref<40x129xf32, #tpu.memory_space<vmem>>, %arg8: memref<1x129xf32, #tpu.memory_space<vmem>>, %arg9: memref<112x32xf32, #tpu.memory_space<vmem>>, %arg10: memref<1x32xf32, #tpu.memory_space<vmem>>, %arg11: memref<32x32xf32, #tpu.memory_space<vmem>>, %arg12: memref<1x32xf32, #tpu.memory_space<vmem>>, %arg13: memref<32x40xf32, #tpu.memory_space<vmem>>, %arg14: memref<1x40xf32, #tpu.memory_space<vmem>>, %arg15: memref<40x129xf32, #tpu.memory_space<vmem>>, %arg16: memref<1x129xf32, #tpu.memory_space<vmem>>, %arg17: memref<2x128xf32, #tpu.memory_space<vmem>>, %arg18: memref<2x1xf32, #tpu.memory_space<vmem>>) attributes {dimension_semantics = [], scalar_prefetch = 0 : i64, scratch_operands = 0 : i64, tpu.core_type = #tpu.core_type<tc>} {
    %c0 = arith.constant 0 : index
    %c0_0 = arith.constant 0 : index
    %0 = vector.load %arg0[%c0, %c0_0] : memref<2x128xf32, #tpu.memory_space<vmem>>, vector<2x128xf32>
    %cst = arith.constant 0.000000e+00 : f32
    %1 = vector.broadcast %cst : f32 to vector<2x1xf32>
    %c0_1 = arith.constant 0 : index
    %c0_2 = arith.constant 0 : index
    %2 = vector.load %arg1[%c0_1, %c0_2] : memref<112x32xf32, #tpu.memory_space<vmem>>, vector<112x32xf32>
    %c0_3 = arith.constant 0 : index
    %c0_4 = arith.constant 0 : index
    %3 = vector.load %arg2[%c0_3, %c0_4] : memref<1x32xf32, #tpu.memory_space<vmem>>, vector<1x32xf32>
    %c0_5 = arith.constant 0 : index
    %c0_6 = arith.constant 0 : index
    %4 = vector.load %arg3[%c0_5, %c0_6] : memref<32x32xf32, #tpu.memory_space<vmem>>, vector<32x32xf32>
    %c0_7 = arith.constant 0 : index
    %c0_8 = arith.constant 0 : index
    %5 = vector.load %arg4[%c0_7, %c0_8] : memref<1x32xf32, #tpu.memory_space<vmem>>, vector<1x32xf32>
    %c0_9 = arith.constant 0 : index
    %c0_10 = arith.constant 0 : index
    %6 = vector.load %arg5[%c0_9, %c0_10] : memref<32x40xf32, #tpu.memory_space<vmem>>, vector<32x40xf32>
    %c0_11 = arith.constant 0 : index
    %c0_12 = arith.constant 0 : index
    %7 = vector.load %arg6[%c0_11, %c0_12] : memref<1x40xf32, #tpu.memory_space<vmem>>, vector<1x40xf32>
    %c0_13 = arith.constant 0 : index
    %c0_14 = arith.constant 0 : index
    %8 = vector.load %arg7[%c0_13, %c0_14] : memref<40x129xf32, #tpu.memory_space<vmem>>, vector<40x129xf32>
    %c0_15 = arith.constant 0 : index
    %c0_16 = arith.constant 0 : index
    %9 = vector.load %arg8[%c0_15, %c0_16] : memref<1x129xf32, #tpu.memory_space<vmem>>, vector<1x129xf32>
    %10 = vector.extract_strided_slice %0 {offsets = [0, 0], sizes = [2, 112], strides = [1, 1]} : vector<2x128xf32> to vector<2x112xf32>
    %11 = vector.extract_strided_slice %0 {offsets = [0, 16], sizes = [2, 112], strides = [1, 1]} : vector<2x128xf32> to vector<2x112xf32>
    %12 = arith.maximumf %10, %11 : vector<2x112xf32>
    %cst_17 = arith.constant dense<0.000000e+00> : vector<2x32xf32>
    %13 = tpu.matmul %12, %2, %cst_17 {dimension_numbers = #tpu.dot_dimension_numbers<[1], [0], [0], [1], [0, 0, 1, 1], [], []>, precision = #tpu.contract_precision<fp32>} : vector<2x112xf32>, vector<112x32xf32>, vector<2x32xf32> -> vector<2x32xf32>
    %14 = vector.broadcast %3 : vector<1x32xf32> to vector<2x32xf32>
    %15 = arith.addf %13, %14 : vector<2x32xf32>
    %cst_18 = arith.constant 0.000000e+00 : f32
    %16 = vector.broadcast %cst_18 : f32 to vector<2x32xf32>
    %17 = arith.maximumf %15, %16 : vector<2x32xf32>
    %cst_19 = arith.constant dense<0.000000e+00> : vector<2x32xf32>
    %18 = tpu.matmul %17, %4, %cst_19 {dimension_numbers = #tpu.dot_dimension_numbers<[1], [0], [0], [1], [0, 0, 1, 1], [], []>, precision = #tpu.contract_precision<fp32>} : vector<2x32xf32>, vector<32x32xf32>, vector<2x32xf32> -> vector<2x32xf32>
    %19 = vector.broadcast %5 : vector<1x32xf32> to vector<2x32xf32>
    %20 = arith.addf %18, %19 : vector<2x32xf32>
    %cst_20 = arith.constant 0.000000e+00 : f32
    %21 = vector.broadcast %cst_20 : f32 to vector<2x32xf32>
    %22 = arith.maximumf %20, %21 : vector<2x32xf32>
    %cst_21 = arith.constant dense<0.000000e+00> : vector<2x40xf32>
    %23 = tpu.matmul %22, %6, %cst_21 {dimension_numbers = #tpu.dot_dimension_numbers<[1], [0], [0], [1], [0, 0, 1, 1], [], []>, precision = #tpu.contract_precision<fp32>} : vector<2x32xf32>, vector<32x40xf32>, vector<2x40xf32> -> vector<2x40xf32>
    %24 = vector.broadcast %7 : vector<1x40xf32> to vector<2x40xf32>
    %25 = arith.addf %23, %24 : vector<2x40xf32>
    %cst_22 = arith.constant dense<0.000000e+00> : vector<2x129xf32>
    %26 = tpu.matmul %25, %8, %cst_22 {dimension_numbers = #tpu.dot_dimension_numbers<[1], [0], [0], [1], [0, 0, 1, 1], [], []>, precision = #tpu.contract_precision<fp32>} : vector<2x40xf32>, vector<40x129xf32>, vector<2x129xf32> -> vector<2x129xf32>
    %27 = vector.broadcast %9 : vector<1x129xf32> to vector<2x129xf32>
    %28 = arith.addf %26, %27 : vector<2x129xf32>
    %29 = vector.extract_strided_slice %28 {offsets = [0, 0], sizes = [2, 128], strides = [1, 1]} : vector<2x129xf32> to vector<2x128xf32>
    %30 = arith.subf %0, %29 : vector<2x128xf32>
    %31 = vector.extract_strided_slice %28 {offsets = [0, 128], sizes = [2, 1], strides = [1, 1]} : vector<2x129xf32> to vector<2x1xf32>
    %32 = arith.addf %1, %31 : vector<2x1xf32>
    %c0_23 = arith.constant 0 : index
    %c0_24 = arith.constant 0 : index
    %33 = vector.load %arg9[%c0_23, %c0_24] : memref<112x32xf32, #tpu.memory_space<vmem>>, vector<112x32xf32>
    %c0_25 = arith.constant 0 : index
    %c0_26 = arith.constant 0 : index
    %34 = vector.load %arg10[%c0_25, %c0_26] : memref<1x32xf32, #tpu.memory_space<vmem>>, vector<1x32xf32>
    %c0_27 = arith.constant 0 : index
    %c0_28 = arith.constant 0 : index
    %35 = vector.load %arg11[%c0_27, %c0_28] : memref<32x32xf32, #tpu.memory_space<vmem>>, vector<32x32xf32>
    %c0_29 = arith.constant 0 : index
    %c0_30 = arith.constant 0 : index
    %36 = vector.load %arg12[%c0_29, %c0_30] : memref<1x32xf32, #tpu.memory_space<vmem>>, vector<1x32xf32>
    %c0_31 = arith.constant 0 : index
    %c0_32 = arith.constant 0 : index
    %37 = vector.load %arg13[%c0_31, %c0_32] : memref<32x40xf32, #tpu.memory_space<vmem>>, vector<32x40xf32>
    %c0_33 = arith.constant 0 : index
    %c0_34 = arith.constant 0 : index
    %38 = vector.load %arg14[%c0_33, %c0_34] : memref<1x40xf32, #tpu.memory_space<vmem>>, vector<1x40xf32>
    %c0_35 = arith.constant 0 : index
    %c0_36 = arith.constant 0 : index
    %39 = vector.load %arg15[%c0_35, %c0_36] : memref<40x129xf32, #tpu.memory_space<vmem>>, vector<40x129xf32>
    %c0_37 = arith.constant 0 : index
    %c0_38 = arith.constant 0 : index
    %40 = vector.load %arg16[%c0_37, %c0_38] : memref<1x129xf32, #tpu.memory_space<vmem>>, vector<1x129xf32>
    %41 = vector.extract_strided_slice %30 {offsets = [0, 0], sizes = [2, 112], strides = [1, 1]} : vector<2x128xf32> to vector<2x112xf32>
    %42 = vector.extract_strided_slice %30 {offsets = [0, 16], sizes = [2, 112], strides = [1, 1]} : vector<2x128xf32> to vector<2x112xf32>
    %43 = arith.maximumf %41, %42 : vector<2x112xf32>
    %cst_39 = arith.constant dense<0.000000e+00> : vector<2x32xf32>
    %44 = tpu.matmul %43, %33, %cst_39 {dimension_numbers = #tpu.dot_dimension_numbers<[1], [0], [0], [1], [0, 0, 1, 1], [], []>, precision = #tpu.contract_precision<fp32>} : vector<2x112xf32>, vector<112x32xf32>, vector<2x32xf32> -> vector<2x32xf32>
    %45 = vector.broadcast %34 : vector<1x32xf32> to vector<2x32xf32>
    %46 = arith.addf %44, %45 : vector<2x32xf32>
    %cst_40 = arith.constant 0.000000e+00 : f32
    %47 = vector.broadcast %cst_40 : f32 to vector<2x32xf32>
    %48 = arith.maximumf %46, %47 : vector<2x32xf32>
    %cst_41 = arith.constant dense<0.000000e+00> : vector<2x32xf32>
    %49 = tpu.matmul %48, %35, %cst_41 {dimension_numbers = #tpu.dot_dimension_numbers<[1], [0], [0], [1], [0, 0, 1, 1], [], []>, precision = #tpu.contract_precision<fp32>} : vector<2x32xf32>, vector<32x32xf32>, vector<2x32xf32> -> vector<2x32xf32>
    %50 = vector.broadcast %36 : vector<1x32xf32> to vector<2x32xf32>
    %51 = arith.addf %49, %50 : vector<2x32xf32>
    %cst_42 = arith.constant 0.000000e+00 : f32
    %52 = vector.broadcast %cst_42 : f32 to vector<2x32xf32>
    %53 = arith.maximumf %51, %52 : vector<2x32xf32>
    %cst_43 = arith.constant dense<0.000000e+00> : vector<2x40xf32>
    %54 = tpu.matmul %53, %37, %cst_43 {dimension_numbers = #tpu.dot_dimension_numbers<[1], [0], [0], [1], [0, 0, 1, 1], [], []>, precision = #tpu.contract_precision<fp32>} : vector<2x32xf32>, vector<32x40xf32>, vector<2x40xf32> -> vector<2x40xf32>
    %55 = vector.broadcast %38 : vector<1x40xf32> to vector<2x40xf32>
    %56 = arith.addf %54, %55 : vector<2x40xf32>
    %cst_44 = arith.constant dense<0.000000e+00> : vector<2x129xf32>
    %57 = tpu.matmul %56, %39, %cst_44 {dimension_numbers = #tpu.dot_dimension_numbers<[1], [0], [0], [1], [0, 0, 1, 1], [], []>, precision = #tpu.contract_precision<fp32>} : vector<2x40xf32>, vector<40x129xf32>, vector<2x129xf32> -> vector<2x129xf32>
    %58 = vector.broadcast %40 : vector<1x129xf32> to vector<2x129xf32>
    %59 = arith.addf %57, %58 : vector<2x129xf32>
    %60 = vector.extract_strided_slice %59 {offsets = [0, 0], sizes = [2, 128], strides = [1, 1]} : vector<2x129xf32> to vector<2x128xf32>
    %61 = arith.subf %30, %60 : vector<2x128xf32>
    %62 = vector.extract_strided_slice %59 {offsets = [0, 128], sizes = [2, 1], strides = [1, 1]} : vector<2x129xf32> to vector<2x1xf32>
    %63 = arith.addf %32, %62 : vector<2x1xf32>
    %c0_45 = arith.constant 0 : index
    %c0_46 = arith.constant 0 : index
    %64 = vector.load %arg17[%c0_45, %c0_46] : memref<2x128xf32, #tpu.memory_space<vmem>>, vector<2x128xf32>
    tpu.vector_store %arg17[%c0_45, %c0_46], %61 {strides = array<i32>} : memref<2x128xf32, #tpu.memory_space<vmem>>, vector<2x128xf32>,
    %c0_47 = arith.constant 0 : index
    %c0_48 = arith.constant 0 : index
    %65 = vector.load %arg18[%c0_47, %c0_48] : memref<2x1xf32, #tpu.memory_space<vmem>>, vector<2x1xf32>
    tpu.vector_store %arg18[%c0_47, %c0_48], %63 {strides = array<i32>} : memref<2x1xf32, #tpu.memory_space<vmem>>, vector<2x1xf32>,
    return
  }
}

</mosaic_0001>

<bundles_post_ra>
// kernel: nhits_stack_forward.1
= control target key start
LH: loop header
LB: loop body
LE: loop exit
PB: predicated region body
PF: predicated region fallthrough
CT: control target
= control target key end

     0   :  { %s3358_s0 = inlined_call_operand.vmem [shape: f32[2,128], index: 0, kind: input, shape index: {}]   ;;  %s3359_s1 = inlined_call_operand.vmem [shape: f32[112,32], index: 1, kind: input, shape index: {}]   ;;  %s3360_s2 = inlined_call_operand.vmem [shape: f32[1,32], index: 2, kind: input, shape index: {}]   ;;  %s3361_s3 = inlined_call_operand.vmem [shape: f32[32,32], index: 3, kind: input, shape index: {}]   ;;  %s3362_s4 = inlined_call_operand.vmem [shape: f32[1,32], index: 4, kind: input, shape index: {}]   ;;  %s3363_s5 = inlined_call_operand.vmem [shape: f32[32,40], index: 5, kind: input, shape index: {}]   ;;  %s3364_s6 = inlined_call_operand.vmem [shape: f32[1,40], index: 6, kind: input, shape index: {}]   ;;  %s3365_s7 = inlined_call_operand.vmem [shape: f32[40,129], index: 7, kind: input, shape index: {}]   ;;  %s3366_s8 = inlined_call_operand.vmem [shape: f32[1,129], index: 8, kind: input, shape index: {}]   ;;  %s3367_s9 = inlined_call_operand.vmem [shape: f32[112,32], index: 9, kind: input, shape index: {}]   ;;  %s3368_s10 = inlined_call_operand.vmem [shape: f32[1,32], index: 10, kind: input, shape index: {}]   ;;  %s3369_s11 = inlined_call_operand.vmem [shape: f32[32,32], index: 11, kind: input, shape index: {}]   ;;  %s3370_s12 = inlined_call_operand.vmem [shape: f32[1,32], index: 12, kind: input, shape index: {}]   ;;  %s3371_s13 = inlined_call_operand.hbm [shape: f32[32,40], index: 13, kind: input, shape index: {}]   ;;  %s3372_s14 = inlined_call_operand.vmem [shape: f32[1,40], index: 14, kind: input, shape index: {}]   ;;  %s3373_s15 = inlined_call_operand.vmem [shape: f32[40,129], index: 15, kind: input, shape index: {}]   ;;  %s3374_s16 = inlined_call_operand.vmem [shape: f32[1,129], index: 16, kind: input, shape index: {}]   ;;  %s3375_s17 = inlined_call_operand.vmem [shape: f32[2,128], index: 17, kind: output, shape index: {0}]   ;;  %s3376_s18 = inlined_call_operand.vmem [shape: f32[2,1], index: 18, kind: output, shape index: {1}]  }
   0x1   :  { %3379 = sst [smem:[#allocation5_spill]] %s3358_s0 }
   0x2   :  { %3380 = sst [smem:[#allocation6_spill]] %s3359_s1 }
   0x3   :  { %3381 = sst [smem:[#allocation7_spill]] %s3360_s2 }
   0x4   :  { %24 = vsyncpa [#allocation3], 0  ;;  %s55_s29 = sshll.u32 %s3371_s13, 4  ;;  %s2431_s30 = smov [#allocation2]   ;;  %s56_s29 = int_to_ptr.hbm [resolvable:$true] %s55_s29 }
   0x5   :  { %s57_s0 = sshll.u32 %s2431_s30, 4  ;;  %s2432_s19 = smov 128   ;;  %s58_s0 = int_to_ptr.vmem [resolvable:$true] %s57_s0 }
   0x6   :  { %s2433_s1 = smov 8  }
   0x7   :  { %63 = dma.hbm_to_vmem [thread:$0]  %s56_s29, 512, %s58_s0, [#allocation3], %s2432_s19, %s2432_s19, %s2433_s1  }
   0x8   :  { %2429 = dma.done.wait [#allocation3], 512  }
   0x9   :  { %2430 = vsyncadd [#allocation3], 4294966784  ;;  %s3382_s22 = sld [smem:[#allocation5_spill]]  ;;  %s2434_s26 = smov 112   ;;  %vm119_vm0 = vcmask 916480   ;;  %vm442_vm1 = vcmask 261120  }
   0xa   :  { %s3383_s24 = sld [smem:[#allocation6_spill]]  ;;  %vm828_vm2 = vcmask 326656   ;;  %vm2383_vm3 = vcmask 1024  }
   0xb   :  { %s3384_s1 = sld [smem:[#allocation7_spill]] }
   0xf   :  { %v2536_v0 = vld [vmem:[%s3382_s22] sm:$0x3] }
  0x10   :  { %v88_v1 = vld [vmem:[%s3383_s24 + $0x68] sm:$0xff]  ;;  %v87_v2 = vld [vmem:[%s3383_s24 + $0x60] sm:$0xff]  ;;  %112 = vrot.lane.b32.xlu0 %v2536_v0, %s2434_s26  ;;  %v86_v5 = vld [vmem:[%s3383_s24 + $0x58] sm:$0xff] }
  0x11   :  { %v2546_v3 = vand.u32 4294901760, %v88_v1  ;;  %v2548_v4 = vand.u32 4294901760, %v87_v2  ;;  %v85_v6 = vld [vmem:[%s3383_s24 + $0x50] sm:$0xff]  ;;  %v84_v7 = vld [vmem:[%s3383_s24 + $0x48] sm:$0xff]  ;;  %v2559_v8 = vand.u32 4294901760, %v86_v5  ;;  %v83_v11 = vld [vmem:[%s3383_s24 + $0x40] sm:$0xff] }
  0x12   :  { %v2561_v9 = vand.u32 4294901760, %v85_v6  ;;  %v2563_v10 = vand.u32 4294901760, %v84_v7  ;;  %v82_v12 = vld [vmem:[%s3383_s24 + $0x38] sm:$0xff]  ;;  %v81_v13 = vld [vmem:[%s3383_s24 + $0x30] sm:$0xff]  ;;  %v2581_v16 = vand.u32 4294901760, %v83_v11  ;;  %v80_v34 = vld [vmem:[%s3383_s24 + $0x28] sm:$0xff] }
  0x13   :  { %v2575_v14 = vsub.f32 %v88_v1, %v2546_v3  ;;  %v2578_v15 = vsub.f32 %v87_v2, %v2548_v4  ;;  %126 = vmatpush.msra.mxu0 %v2546_v3  ;;  %v2583_v17 = vand.u32 4294901760, %v82_v12  ;;  %306 = vmatpush.msra.mxu3 %v2546_v3  ;;  %v2587_v18 = vsub.f32 %v86_v5, %v2559_v8  ;;  %v79_v35 = vld [vmem:[%s3383_s24 + $0x20] sm:$0xff]  ;;  %v78_v39 = vld [vmem:[%s3383_s24 + $0x18] sm:$0xff]  ;;  %v77_v41 = vld [vmem:[%s3383_s24 + $0x10] sm:$0xff] }
  0x14   :  { %v2590_v19 = vsub.f32 %v85_v6, %v2561_v9  ;;  %v2593_v20 = vsub.f32 %v84_v7, %v2563_v10  ;;  %v2595_v21 = vand.u32 4294901760, %v81_v13  ;;  %v2601_v24 = vsub.f32 %v83_v11, %v2581_v16  ;;  %v76_v49 = vld [vmem:[%s3383_s24 + $0x8] sm:$0xff]  ;;  %v75_v55 = vld [vmem:[%s3383_s24] sm:$0xff] }
  0x15   :  { %v166_v22 = vand.u32 4294901760, %v2575_v14  ;;  %v172_v23 = vand.u32 4294901760, %v2578_v15  ;;  %128 = vmatpush.msra.mxu0 %v2548_v4  ;;  %257 = vmatpush.msra.mxu2 %v2575_v14  ;;  %v178_v25 = vand.u32 4294901760, %v2587_v18  ;;  %v2607_v27 = vsub.f32 %v82_v12, %v2583_v17 }
  0x16   :  { %v184_v26 = vand.u32 4294901760, %v2590_v19  ;;  %308 = vmatpush.msra.mxu3 %v2548_v4  ;;  %v190_v30 = vand.u32 4294901760, %v2593_v20  ;;  %v196_v32 = vand.u32 4294901760, %v2601_v24  ;;  %v2624_v33 = vsub.f32 %v81_v13, %v2595_v21 }
  0x17   :  { %v167_v28 = vsub.f32 %v2575_v14, %v166_v22  ;;  %v173_v29 = vsub.f32 %v2578_v15, %v172_v23  ;;  %130 = vmatpush.msra.mxu0 %v2559_v8  ;;  %260 = vmatpush.msra.mxu2 %v2578_v15  ;;  %v179_v31 = vsub.f32 %v2587_v18, %v178_v25  ;;  %v202_v40 = vand.u32 4294901760, %v2607_v27 }
  0x18   :  { %310 = vmatpush.msra.mxu3 %v2559_v8  ;;  %v185_v38 = vsub.f32 %v2590_v19, %v184_v26  ;;  %v191_v43 = vsub.f32 %v2593_v20, %v190_v30  ;;  %v2650_v44 = vand.u32 4294901760, %v80_v34  ;;  %v2652_v45 = vand.u32 4294901760, %v79_v35 }
  0x19   :  { %v168_v36 = vand.u32 4294901760, %v167_v28  ;;  %v174_v37 = vand.u32 4294901760, %v173_v29  ;;  %132 = vmatpush.msra.mxu0 %v2561_v9  ;;  %263 = vmatpush.msra.mxu2 %v2587_v18  ;;  %v180_v42 = vand.u32 4294901760, %v179_v31  ;;  %v197_v46 = vsub.f32 %v2601_v24, %v196_v32 }
  0x1a   :  { %312 = vmatpush.msra.mxu3 %v2561_v9  ;;  %v208_v47 = vand.u32 4294901760, %v2624_v33  ;;  %v2658_v48 = vand.u32 4294901760, %v78_v39  ;;  %v186_v50 = vand.u32 4294901760, %v185_v38  ;;  %v2666_v51 = vsub.f32 %v80_v34, %v2650_v44 }
  0x1b   :  { %169 = vmatpush.msra.mxu1 %v168_v36  ;;  %134 = vmatpush.msra.mxu0 %v2563_v10  ;;  %v2670_v52 = vsub.f32 %v79_v35, %v2652_v45  ;;  %v2672_v53 = vand.u32 4294901760, %v77_v41  ;;  %v203_v54 = vsub.f32 %v2607_v27, %v202_v40  ;;  %v192_v56 = vand.u32 4294901760, %v191_v43 }
  0x1c   :  { %266 = vmatpush.msra.mxu2 %v2590_v19  ;;  %314 = vmatpush.msra.mxu3 %v2563_v10  ;;  %v214_v57 = vand.u32 4294901760, %v2666_v51  ;;  %v2685_v58 = vsub.f32 %v78_v39, %v2658_v48  ;;  %v2687_v59 = vand.u32 4294901760, %v76_v49  ;;  %v209_v60 = vsub.f32 %v2624_v33, %v208_v47 }
  0x1d   :  { %175 = vmatpush.msra.mxu1 %v174_v37  ;;  %136 = vmatpush.msra.mxu0 %v2581_v16  ;;  %v198_v61 = vand.u32 4294901760, %v197_v46  ;;  %v220_v62 = vand.u32 4294901760, %v2670_v52  ;;  %v2697_v63 = vsub.f32 %v77_v41, %v2672_v53  ;;  %v2699_v1 = vand.u32 4294901760, %v75_v55 }
  0x1e   :  { %269 = vmatpush.msra.mxu2 %v2593_v20  ;;  %316 = vmatpush.msra.mxu3 %v2581_v16  ;;  %v204_v2 = vand.u32 4294901760, %v203_v54  ;;  %v215_v5 = vsub.f32 %v2666_v51, %v214_v57  ;;  %v226_v6 = vand.u32 4294901760, %v2685_v58  ;;  %v2709_v7 = vsub.f32 %v76_v49, %v2687_v59 }
  0x1f   :  { %181 = vmatpush.msra.mxu1 %v180_v42  ;;  %138 = vmatpush.msra.mxu0 %v2583_v17  ;;  %v210_v11 = vand.u32 4294901760, %v209_v60  ;;  %v221_v12 = vsub.f32 %v2670_v52, %v220_v62  ;;  %v232_v13 = vand.u32 4294901760, %v2697_v63  ;;  %v243_v28 = vsub.f32 %v75_v55, %v2699_v1 }
  0x20   :  { %272 = vmatpush.msra.mxu2 %v2601_v24  ;;  %318 = vmatpush.msra.mxu3 %v2583_v17  ;;  %v216_v29 = vand.u32 4294901760, %v215_v5  ;;  %v227_v31 = vsub.f32 %v2685_v58, %v226_v6  ;;  %v238_v34 = vand.u32 4294901760, %v2709_v7 }
  0x21   :  { %187 = vmatpush.msra.mxu1 %v186_v50  ;;  %140 = vmatpush.msra.mxu0 %v2595_v21  ;;  %v222_v35 = vand.u32 4294901760, %v221_v12  ;;  %v233_v36 = vsub.f32 %v2697_v63, %v232_v13  ;;  %v244_v37 = vand.u32 4294901760, %v243_v28 }
  0x22   :  { %275 = vmatpush.msra.mxu2 %v2607_v27  ;;  %320 = vmatpush.msra.mxu3 %v2595_v21  ;;  %v228_v38 = vand.u32 4294901760, %v227_v31  ;;  %v239_v39 = vsub.f32 %v2709_v7, %v238_v34 }
  0x23   :  { %193 = vmatpush.msra.mxu1 %v192_v56  ;;  %142 = vmatpush.msra.mxu0 %v2650_v44  ;;  %v234_v41 = vand.u32 4294901760, %v233_v36  ;;  %v245_v42 = vsub.f32 %v243_v28, %v244_v37 }
  0x24   :  { %278 = vmatpush.msra.mxu2 %v2624_v33  ;;  %322 = vmatpush.msra.mxu3 %v2650_v44  ;;  %v240_v43 = vand.u32 4294901760, %v239_v39 }
  0x25   :  { %199 = vmatpush.msra.mxu1 %v198_v61  ;;  %144 = vmatpush.msra.mxu0 %v2652_v45  ;;  %v246_v46 = vand.u32 4294901760, %v245_v42  ;;  %v95_v42 = vld [vmem:[%s3363_s5] sm:$0xff] }
  0x26   :  { %281 = vmatpush.msra.mxu2 %v2666_v51  ;;  %324 = vmatpush.msra.mxu3 %v2652_v45 }
  0x27   :  { %205 = vmatpush.msra.mxu1 %v204_v2  ;;  %146 = vmatpush.msra.mxu0 %v2658_v48 }
  0x28   :  { %284 = vmatpush.msra.mxu2 %v2670_v52  ;;  %326 = vmatpush.msra.mxu3 %v2658_v48 }
  0x29   :  { %211 = vmatpush.msra.mxu1 %v210_v11  ;;  %148 = vmatpush.msra.mxu0 %v2672_v53 }
  0x2a   :  { %287 = vmatpush.msra.mxu2 %v2685_v58  ;;  %328 = vmatpush.msra.mxu3 %v2672_v53 }
  0x2b   :  { %217 = vmatpush.msra.mxu1 %v216_v29  ;;  %150 = vmatpush.msra.mxu0 %v2687_v59  ;;  %v98_v29 = vld [vmem:[%s3363_s5 + $0x18] sm:$0xff] }
  0x2c   :  { %290 = vmatpush.msra.mxu2 %v2697_v63  ;;  %330 = vmatpush.msra.mxu3 %v2687_v59  ;;  %v650_v31 = vand.u32 4294901760, %v98_v29 }
  0x2d   :  { %223 = vmatpush.msra.mxu1 %v222_v35  ;;  %152 = vmatpush.msra.mxu0 %v2699_v1 }
  0x2e   :  { %293 = vmatpush.msra.mxu2 %v2709_v7  ;;  %332 = vmatpush.msra.mxu3 %v2699_v1  ;;  %v680_v35 = vsub.f32 %v98_v29, %v650_v31 }
  0x2f   :  { %345 = vmatpush.msrb.mxu0 %v166_v22  ;;  %229 = vmatpush.msra.mxu1 %v228_v38 }
  0x30   :  { %296 = vmatpush.msra.mxu2 %v243_v28  ;;  %v681_v38 = vand.u32 4294901760, %v680_v35 }
  0x31   :  { %349 = vmatpush.msrb.mxu0 %v172_v23  ;;  %235 = vmatpush.msra.mxu1 %v234_v41 }
  0x33   :  { %353 = vmatpush.msrb.mxu0 %v178_v25  ;;  %241 = vmatpush.msra.mxu1 %v240_v43  ;;  %v90_v25 = vld [vmem:[%s3361_s3] sm:$0xff]  ;;  %v682_v43 = vsub.f32 %v680_v35, %v681_v38 }
  0x35   :  { %357 = vmatpush.msrb.mxu0 %v184_v26  ;;  %247 = vmatpush.msra.mxu1 %v246_v46 }
  0x37   :  { %406 = vmatpush.msrb.mxu1 %v2546_v3  ;;  %361 = vmatpush.msrb.mxu0 %v190_v30 }
  0x39   :  { %408 = vmatpush.msrb.mxu1 %v2548_v4  ;;  %365 = vmatpush.msrb.mxu0 %v196_v32  ;;  %v464_v32 = vand.u32 4294901760, %v90_v25 }
  0x3b   :  { %410 = vmatpush.msrb.mxu1 %v2559_v8  ;;  %369 = vmatpush.msrb.mxu0 %v202_v40 }
  0x3d   :  { %412 = vmatpush.msrb.mxu1 %v2561_v9  ;;  %373 = vmatpush.msrb.mxu0 %v208_v47 }
  0x3f   :  { %414 = vmatpush.msrb.mxu1 %v2563_v10  ;;  %377 = vmatpush.msrb.mxu0 %v214_v57 }
  0x41   :  { %416 = vmatpush.msrb.mxu1 %v2581_v16  ;;  %381 = vmatpush.msrb.mxu0 %v220_v62 }
  0x43   :  { %418 = vmatpush.msrb.mxu1 %v2583_v17  ;;  %385 = vmatpush.msrb.mxu0 %v226_v6  ;;  %v93_v17 = vld [vmem:[%s3361_s3 + $0x18] sm:$0xff] }
  0x44   :  { %v458_v18 = vand.u32 4294901760, %v93_v17 }
  0x45   :  { %420 = vmatpush.msrb.mxu1 %v2595_v21  ;;  %389 = vmatpush.msrb.mxu0 %v232_v13  ;;  %v91_v21 = vld [vmem:[%s3361_s3 + $0x8] sm:$0xff] }
  0x46   :  { %v2779_v19 = vsub.f32 %v93_v17, %v458_v18  ;;  %459 = vmatpush.msrb.mxu2 %v458_v18  ;;  %v462_v24 = vand.u32 4294901760, %v91_v21 }
  0x47   :  { %422 = vmatpush.msrb.mxu1 %v2650_v44  ;;  %393 = vmatpush.msrb.mxu0 %v238_v34  ;;  %v97_v34 = vld [vmem:[%s3363_s5 + $0x10] sm:$0xff] }
  0x48   :  { %v489_v22 = vand.u32 4294901760, %v2779_v19  ;;  %v500_v30 = vsub.f32 %v91_v21, %v462_v24  ;;  %v652_v36 = vand.u32 4294901760, %v97_v34 }
  0x49   :  { %424 = vmatpush.msrb.mxu1 %v2652_v45  ;;  %397 = vmatpush.msrb.mxu0 %v244_v37  ;;  %v506_v45 = vsub.f32 %v90_v25, %v464_v32  ;;  %v96_v37 = vld [vmem:[%s3363_s5 + $0x8] sm:$0xff] }
  0x4a   :  { %v490_v26 = vsub.f32 %v2779_v19, %v489_v22  ;;  %v501_v44 = vand.u32 4294901760, %v500_v30  ;;  %v686_v39 = vsub.f32 %v97_v34, %v652_v36  ;;  %v654_v41 = vand.u32 4294901760, %v96_v37 }
  0x4b   :  { %426 = vmatpush.msrb.mxu1 %v2658_v48  ;;  %v507_v49 = vand.u32 4294901760, %v506_v45 }
  0x4c   :  { %v491_v33 = vand.u32 4294901760, %v490_v26  ;;  %v502_v48 = vsub.f32 %v500_v30, %v501_v44  ;;  %v687_v46 = vand.u32 4294901760, %v686_v39 }
  0x4d   :  { %428 = vmatpush.msrb.mxu1 %v2672_v53  ;;  %v508_v51 = vsub.f32 %v506_v45, %v507_v49  ;;  %v2398_v53 = vld [vmem:[%s3384_s1] ss:$0 sm:$0xff] }
  0x4e   :  { %492 = vmatpush.msrb.mxu3 %v491_v33  ;;  %v503_v50 = vand.u32 4294901760, %v502_v48 }
  0x4f   :  { %430 = vmatpush.msrb.mxu1 %v2687_v59  ;;  %v509_v52 = vand.u32 4294901760, %v508_v51 }
  0x51   :  { %432 = vmatpush.msrb.mxu1 %v2699_v1 }
  0x82   :  { %v113_v3 = vpop.permute.xlu0 %112 }
  0x83   :  { %v115_v4 = vmax.f32 %v2536_v0, %v113_v3  ;;  %v92_v0 = vld [vmem:[%s3361_s3 + $0x10] sm:$0xff]  ;;  %v692_v3 = vsub.f32 %v96_v37, %v654_v41 }
  0x84   :  { %v460_v20 = vand.u32 4294901760, %v92_v0 }
  0x85   :  { %v121_v8 = vsel %vm119_vm0, %v115_v4, 0  ;;  %v656_v4 = vand.u32 4294901760, %v95_v42 }
  0x86   :  { %v153_v9 = vand.u32 4294901760, %v121_v8  ;;  %v494_v23 = vsub.f32 %v92_v0, %v460_v20  ;;  %461 = vmatpush.msrb.mxu2 %v460_v20 }
  0x88   :  { %v154_v10 = vsub.f32 %v121_v8, %v153_v9  ;;  %249 = vmatmul.f32.vlgmr.msra.gmra.mxu1 %v153_v9  ;;  %v495_v27 = vand.u32 4294901760, %v494_v23  ;;  %463 = vmatpush.msrb.mxu2 %v462_v24  ;;  %v683_v8 = vand.u32 4294901760, %v682_v43  ;;  %v107_v43 = vld [vmem:[%s3365_s7 + $0x38] sm:$0xff] }
  0x89   :  { %751 = vmatpush.msra.mxu1 %v650_v31 }
  0x8a   :  { %299 = vmatmul.f32.vlgmr.msra.gmra.mxu2 %v154_v10  ;;  %v155_v14 = vand.u32 4294901760, %v154_v10  ;;  %v496_v40 = vsub.f32 %v494_v23, %v495_v27 }
  0x8b   :  { %465 = vmatpush.msrb.mxu2 %v464_v32  ;;  %753 = vmatpush.msra.mxu1 %v652_v36 }
  0x8c   :  { %336 = vmatmul.f32.vlgmr.msra.gmra.mxu3 %v155_v14  ;;  %v156_v15 = vsub.f32 %v154_v10, %v155_v14  ;;  %v497_v47 = vand.u32 4294901760, %v496_v40  ;;  %v693_v10 = vand.u32 4294901760, %v692_v3  ;;  %v698_v14 = vsub.f32 %v95_v42, %v656_v4 }
  0x8d   :  { %530 = vmatpush.msra.mxu2 %v2779_v19  ;;  %755 = vmatpush.msra.mxu1 %v654_v41 }
  0x8e   :  { %v157_v16 = vand.u32 4294901760, %v156_v15  ;;  %498 = vmatpush.msrb.mxu3 %v497_v47  ;;  %v699_v17 = vand.u32 4294901760, %v698_v14 }
  0x8f   :  { %533 = vmatpush.msra.mxu2 %v494_v23  ;;  %757 = vmatpush.msra.mxu1 %v656_v4 }
  0x90   :  { %158 = vmatmul.f32.vlgmr.msra.gmra.mxu0 %v157_v16  ;;  %434 = vmatmul.f32.vlgmr.msrb.gmra.mxu1 %v153_v9  ;;  %v694_v16 = vsub.f32 %v692_v3, %v693_v10  ;;  %v700_v0 = vsub.f32 %v698_v14, %v699_v17 }
  0x91   :  { %536 = vmatpush.msra.mxu2 %v500_v30  ;;  %504 = vmatpush.msrb.mxu3 %v503_v50 }
  0x92   :  { %722 = vmatpush.msra.mxu0 %v680_v35  ;;  %v701_v19 = vand.u32 4294901760, %v700_v0 }
  0x93   :  { %539 = vmatpush.msra.mxu2 %v506_v45  ;;  %510 = vmatpush.msrb.mxu3 %v509_v52 }
  0x94   :  { %725 = vmatpush.msra.mxu0 %v686_v39 }
  0x95   :  { %559 = vmatpush.msra.mxu3 %v458_v18 }
  0x96   :  { %728 = vmatpush.msra.mxu0 %v692_v3 }
  0x97   :  { %561 = vmatpush.msra.mxu3 %v460_v20 }
  0x98   :  { %399 = vmatmul.f32.vlgmr.msrb.gmra.mxu0 %v153_v9  ;;  %v688_v9 = vsub.f32 %v686_v39, %v687_v46 }
  0x99   :  { %563 = vmatpush.msra.mxu3 %v462_v24  ;;  %731 = vmatpush.msra.mxu0 %v698_v14 }
  0x9a   :  { %v689_v15 = vand.u32 4294901760, %v688_v9 }
  0x9b   :  { %565 = vmatpush.msra.mxu3 %v464_v32 }
 0x105   :  { %v250_v54 = vpop.f32.mrf.mxu1 }
 0x10d   :  { %v159_v55 = vpop.f32.mrf.mxu0  ;;  %v300_v58 = vpop.f32.mrf.mxu2 }
 0x10e   :  { %v160_v56 = vadd.f32 %v2398_v53, %v159_v55  ;;  %v435_v1 = vpop.f32.mrf.mxu1  ;;  %v108_v53 = vld [vmem:[%s3365_s7 + $0x40] sm:$0xff]  ;;  %v106_v55 = vld [vmem:[%s3365_s7 + $0x30] sm:$0xff] }
 0x10f   :  { %v337_v60 = vpop.f32.mrf.mxu3 }
 0x110   :  { %v251_v57 = vadd.f32 %v250_v54, %v160_v56  ;;  %v2813_v54 = vand.u32 4294901760, %v108_v53 }
 0x112   :  { %v301_v59 = vadd.f32 %v300_v58, %v251_v57  ;;  %v874_v56 = vsub.f32 %v108_v53, %v2813_v54  ;;  %v2819_v57 = vand.u32 4294901760, %v106_v55  ;;  %844 = vmatpush.msrb.mxu0 %v2813_v54  ;;  %v104_v58 = vld [vmem:[%s3365_s7 + $0x20] sm:$0xff] }
 0x114   :  { %v338_v61 = vadd.f32 %v337_v60, %v301_v59  ;;  %v875_v59 = vand.u32 4294901760, %v874_v56  ;;  %v880_v60 = vsub.f32 %v106_v55, %v2819_v57  ;;  %846 = vmatpush.msrb.mxu0 %v2819_v57 }
 0x115   :  { %v400_v62 = vpop.f32.mrf.mxu0 }
 0x116   :  { %v401_v63 = vadd.f32 %v400_v62, %v338_v61  ;;  %v2827_v61 = vand.u32 4294901760, %v104_v58  ;;  %v102_v62 = vld [vmem:[%s3365_s7 + $0x10] sm:$0xff] }
 0x118   :  { %v436_v2 = vadd.f32 %v435_v1, %v401_v63  ;;  %v876_v63 = vsub.f32 %v874_v56, %v875_v59  ;;  %v881_v1 = vand.u32 4294901760, %v880_v60  ;;  %848 = vmatpush.msrb.mxu0 %v2827_v61 }
 0x11a   :  { %v438_v5 = vmax.f32 %v436_v2, 0.0  ;;  %v886_v2 = vsub.f32 %v104_v58, %v2827_v61 }
 0x11c   :  { %v444_v6 = vsel %vm442_vm1, %v438_v5, 0  ;;  %v2835_v5 = vand.u32 4294901760, %v102_v62 }
 0x11d   :  { %v466_v7 = vand.u32 4294901760, %v444_v6 }
 0x11e   :  { %850 = vmatpush.msrb.mxu0 %v2835_v5 }
 0x11f   :  { %v467_v11 = vsub.f32 %v444_v6, %v466_v7  ;;  %512 = vmatmul.f32.vlgmr.msrb.gmra.mxu3 %v466_v7  ;;  %v100_v6 = vld [vmem:[%s3365_s7] sm:$0xff] }
 0x120   :  { %619 = vmatpush.msrb.mxu3 %v458_v18  ;;  %v695_v18 = vand.u32 4294901760, %v694_v16  ;;  %v103_v16 = vld [vmem:[%s3365_s7 + $0x18] sm:$0xff] }
 0x121   :  { %v468_v12 = vand.u32 4294901760, %v467_v11  ;;  %v2880_v0 = vand.u32 4294901760, %v103_v16 }
 0x122   :  { %621 = vmatpush.msrb.mxu3 %v460_v20 }
 0x123   :  { %v469_v13 = vsub.f32 %v467_v11, %v468_v12 }
 0x124   :  { %623 = vmatpush.msrb.mxu3 %v462_v24 }
 0x125   :  { %v470_v28 = vand.u32 4294901760, %v469_v13  ;;  %v892_v13 = vsub.f32 %v102_v62, %v2835_v5 }
 0x126   :  { %625 = vmatpush.msrb.mxu3 %v464_v32 }
 0x127   :  { %471 = vmatmul.f32.vlgmr.msrb.gmra.mxu2 %v470_v28  ;;  %569 = vmatmul.f32.vlgmr.msra.gmra.mxu3 %v468_v12  ;;  %v887_v12 = vand.u32 4294901760, %v886_v2  ;;  %v2844_v28 = vand.u32 4294901760, %v100_v6  ;;  %v893_v34 = vand.u32 4294901760, %v892_v13 }
 0x128   :  { %588 = vmatpush.msrb.mxu2 %v489_v22  ;;  %684 = vmatpush.msra.mxu3 %v683_v8  ;;  %v2399_v22 = vld [vmem:[%s3362_s4] ss:$0 sm:$0xff]  ;;  %v105_v8 = vld [vmem:[%s3365_s7 + $0x28] sm:$0xff] }
 0x129   :  { %v898_v35 = vsub.f32 %v100_v6, %v2844_v28  ;;  %852 = vmatpush.msrb.mxu0 %v2844_v28  ;;  %v894_v37 = vsub.f32 %v892_v13, %v893_v34  ;;  %v2869_v14 = vand.u32 4294901760, %v105_v8 }
 0x12a   :  { %592 = vmatpush.msrb.mxu2 %v495_v27  ;;  %690 = vmatpush.msra.mxu3 %v689_v15 }
 0x12b   :  { %v899_v39 = vand.u32 4294901760, %v898_v35  ;;  %v895_v42 = vand.u32 4294901760, %v894_v37 }
 0x12c   :  { %596 = vmatpush.msrb.mxu2 %v501_v44  ;;  %696 = vmatpush.msra.mxu3 %v695_v18 }
 0x12e   :  { %600 = vmatpush.msrb.mxu2 %v507_v49  ;;  %702 = vmatpush.msra.mxu3 %v701_v19  ;;  %v2883_v19 = vsub.f32 %v105_v8, %v2869_v14 }
 0x12f   :  { %542 = vmatmul.f32.vlgmr.msra.gmra.mxu2 %v467_v11  ;;  %627 = vmatmul.f32.vlgmr.msrb.gmra.mxu3 %v466_v7  ;;  %v882_v11 = vsub.f32 %v880_v60, %v881_v1 }
 0x130   :  { %651 = vmatpush.msra.mxu2 %v650_v31  ;;  %811 = vmatpush.msrb.mxu3 %v650_v31  ;;  %v888_v31 = vsub.f32 %v886_v2, %v887_v12 }
 0x131   :  { %v883_v29 = vand.u32 4294901760, %v882_v11  ;;  %v1242_v11 = vld [vmem:[%s3367_s9 + $0x60] sm:$0xff] }
 0x132   :  { %653 = vmatpush.msra.mxu2 %v652_v36  ;;  %813 = vmatpush.msrb.mxu3 %v652_v36  ;;  %v889_v36 = vand.u32 4294901760, %v888_v31  ;;  %v1240_v31 = vld [vmem:[%s3367_s9 + $0x50] sm:$0xff] }
 0x134   :  { %655 = vmatpush.msra.mxu2 %v654_v41  ;;  %815 = vmatpush.msrb.mxu3 %v654_v41 }
 0x136   :  { %657 = vmatpush.msra.mxu2 %v656_v4  ;;  %817 = vmatpush.msrb.mxu3 %v656_v4  ;;  %v2862_v4 = vand.u32 4294901760, %v107_v43 }
 0x137   :  { %602 = vmatmul.f32.vlgmr.msrb.gmra.mxu2 %v466_v7  ;;  %v877_v7 = vand.u32 4294901760, %v876_v63 }
 0x138   :  { %780 = vmatpush.msrb.mxu2 %v681_v38  ;;  %v109_v38 = vld [vmem:[%s3365_s7 + $0x48] sm:$0xff]  ;;  %v2872_v15 = vsub.f32 %v107_v43, %v2862_v4 }
 0x139   :  { %878 = vmatpush.msrb.mxu1 %v877_v7  ;;  %v2853_v41 = vand.u32 4294901760, %v109_v38  ;;  %v1243_v7 = vld [vmem:[%s3367_s9 + $0x68] sm:$0xff] }
 0x13a   :  { %784 = vmatpush.msrb.mxu2 %v687_v46  ;;  %v900_v46 = vsub.f32 %v898_v35, %v899_v39  ;;  %v1079_v18 = vand.u32 4294901760, %v2872_v15 }
 0x13b   :  { %884 = vmatpush.msrb.mxu1 %v883_v29  ;;  %v2860_v3 = vsub.f32 %v109_v38, %v2853_v41 }
 0x13c   :  { %788 = vmatpush.msrb.mxu2 %v693_v10  ;;  %v901_v9 = vand.u32 4294901760, %v900_v46 }
 0x13d   :  { %890 = vmatpush.msrb.mxu1 %v889_v36  ;;  %v1073_v10 = vand.u32 4294901760, %v2860_v3  ;;  %v2953_v36 = vand.u32 4294901760, %v1240_v31 }
 0x13e   :  { %792 = vmatpush.msrb.mxu2 %v699_v17 }
 0x13f   :  { %896 = vmatpush.msrb.mxu1 %v895_v42  ;;  %v1074_v17 = vsub.f32 %v2860_v3, %v1073_v10  ;;  %v2968_v42 = vld [vmem:[%s3366_s8] sm:$0x3]  ;;  %v2984_v8 = vsub.f32 %v1240_v31, %v2953_v36 }
 0x141   :  { %902 = vmatpush.msrb.mxu1 %v901_v9 }
 0x1a2   :  { %v513_v20 = vpop.f32.mrf.mxu3 }
 0x1aa   :  { %v472_v21 = vpop.f32.mrf.mxu2  ;;  %v570_v24 = vpop.f32.mrf.mxu3 }
 0x1ab   :  { %v473_v23 = vadd.f32 %v2399_v22, %v472_v21  ;;  %v1075_v21 = vand.u32 4294901760, %v1074_v17  ;;  %v1080_v22 = vsub.f32 %v2872_v15, %v1079_v18 }
 0x1ad   :  { %v514_v26 = vadd.f32 %v513_v20, %v473_v23  ;;  %v101_v20 = vld [vmem:[%s3365_s7 + $0x8] sm:$0xff]  ;;  %v1085_v23 = vand.u32 4294901760, %v2883_v19 }
 0x1b2   :  { %v543_v25 = vpop.f32.mrf.mxu2  ;;  %v628_v40 = vpop.f32.mrf.mxu3 }
 0x1b3   :  { %v544_v27 = vadd.f32 %v543_v25, %v514_v26  ;;  %v2896_v25 = vsub.f32 %v103_v16, %v2880_v0  ;;  %v1081_v26 = vand.u32 4294901760, %v1080_v22 }
 0x1b5   :  { %v571_v30 = vadd.f32 %v570_v24, %v544_v27  ;;  %v2892_v24 = vand.u32 4294901760, %v101_v20  ;;  %v1086_v27 = vsub.f32 %v2883_v19, %v1085_v23 }
 0x1ba   :  { %v603_v32 = vpop.f32.mrf.mxu2 }
 0x1bb   :  { %v604_v33 = vadd.f32 %v603_v32, %v571_v30  ;;  %v2901_v30 = vsub.f32 %v101_v20, %v2892_v24  ;;  %v1091_v32 = vand.u32 4294901760, %v2896_v25 }
 0x1bd   :  { %v629_v44 = vadd.f32 %v628_v40, %v604_v33  ;;  %v1087_v33 = vand.u32 4294901760, %v1086_v27  ;;  %v1097_v40 = vand.u32 4294901760, %v2901_v30  ;;  %v1235_v27 = vld [vmem:[%s3367_s9 + $0x28] sm:$0xff] }
 0x1bf   :  { %v631_v45 = vmax.f32 %v629_v44, 0.0  ;;  %v1092_v44 = vsub.f32 %v2896_v25, %v1091_v32 }
 0x1c1   :  { %v636_v47 = vsel %vm442_vm1, %v631_v45, 0  ;;  %v1098_v45 = vsub.f32 %v2901_v30, %v1097_v40 }
 0x1c2   :  { %v658_v48 = vand.u32 4294901760, %v636_v47 }
 0x1c4   :  { %v659_v49 = vsub.f32 %v636_v47, %v658_v48  ;;  %704 = vmatmul.f32.vlgmr.msra.gmra.mxu3 %v658_v48  ;;  %v1093_v47 = vand.u32 4294901760, %v1092_v44 }
 0x1c5   :  { %952 = vmatpush.msra.mxu3 %v2813_v54 }
 0x1c6   :  { %734 = vmatmul.f32.vlgmr.msra.gmra.mxu0 %v659_v49  ;;  %v660_v50 = vand.u32 4294901760, %v659_v49 }
 0x1c7   :  { %954 = vmatpush.msra.mxu3 %v2819_v57  ;;  %982 = vmatpush.msra.mxu0 %v875_v59 }
 0x1c8   :  { %761 = vmatmul.f32.vlgmr.msra.gmra.mxu1 %v660_v50  ;;  %v661_v51 = vsub.f32 %v659_v49, %v660_v50  ;;  %v2400_v49 = vld [vmem:[%s3364_s6] ss:$0 sm:$0xff] }
 0x1c9   :  { %956 = vmatpush.msra.mxu3 %v2827_v61  ;;  %986 = vmatpush.msra.mxu0 %v881_v1 }
 0x1ca   :  { %v662_v52 = vand.u32 4294901760, %v661_v51  ;;  %1016 = vmatpush.msra.mxu1 %v2813_v54 }
 0x1cb   :  { %958 = vmatpush.msra.mxu3 %v2835_v5  ;;  %990 = vmatpush.msra.mxu0 %v887_v12  ;;  %v1241_v12 = vld [vmem:[%s3367_s9 + $0x58] sm:$0xff] }
 0x1cc   :  { %663 = vmatmul.f32.vlgmr.msra.gmra.mxu2 %v662_v52  ;;  %819 = vmatmul.f32.vlgmr.msrb.gmra.mxu3 %v658_v48  ;;  %v2942_v29 = vand.u32 4294901760, %v1241_v12 }
 0x1cd   :  { %921 = vmatpush.msra.mxu2 %v874_v56  ;;  %960 = vmatpush.msra.mxu3 %v2844_v28 }
 0x1ce   :  { %994 = vmatpush.msra.mxu0 %v893_v34  ;;  %1018 = vmatpush.msra.mxu1 %v2819_v57  ;;  %v1239_v34 = vld [vmem:[%s3367_s9 + $0x48] sm:$0xff] }
 0x1cf   :  { %924 = vmatpush.msra.mxu2 %v880_v60  ;;  %1076 = vmatpush.msrb.mxu3 %v1075_v21  ;;  %v2955_v37 = vand.u32 4294901760, %v1239_v34 }
 0x1d0   :  { %998 = vmatpush.msra.mxu0 %v899_v39  ;;  %1020 = vmatpush.msra.mxu1 %v2827_v61  ;;  %v1237_v39 = vld [vmem:[%s3367_s9 + $0x38] sm:$0xff] }
 0x1d1   :  { %927 = vmatpush.msra.mxu2 %v886_v2  ;;  %1082 = vmatpush.msrb.mxu3 %v1081_v26  ;;  %v2987_v9 = vsub.f32 %v1239_v34, %v2955_v37 }
 0x1d2   :  { %1022 = vmatpush.msra.mxu1 %v2835_v5 }
 0x1d3   :  { %930 = vmatpush.msra.mxu2 %v892_v13  ;;  %1088 = vmatpush.msrb.mxu3 %v1087_v33  ;;  %v2938_v13 = vand.u32 4294901760, %v1243_v7 }
 0x1d4   :  { %794 = vmatmul.f32.vlgmr.msrb.gmra.mxu2 %v658_v48  ;;  %1024 = vmatpush.msra.mxu1 %v2844_v28  ;;  %v1099_v48 = vand.u32 4294901760, %v1098_v45  ;;  %v2940_v28 = vand.u32 4294901760, %v1242_v11 }
 0x1d5   :  { %933 = vmatpush.msra.mxu2 %v898_v35  ;;  %1094 = vmatpush.msrb.mxu3 %v1093_v47  ;;  %v1238_v35 = vld [vmem:[%s3367_s9 + $0x40] sm:$0xff]  ;;  %v2971_v43 = vsub.f32 %v1243_v7, %v2938_v13  ;;  %v1233_v47 = vld [vmem:[%s3367_s9 + $0x18] sm:$0xff] }
 0x1d6   :  { %v2957_v38 = vand.u32 4294901760, %v1238_v35  ;;  %v2974_v46 = vsub.f32 %v1242_v11, %v2940_v28  ;;  %v1230_v7 = vld [vmem:[%s3367_s9] sm:$0xff] }
 0x1d7   :  { %1042 = vmatpush.msrb.mxu2 %v2853_v41  ;;  %1100 = vmatpush.msrb.mxu3 %v1099_v48 }
 0x1d8   :  { %v1326_v16 = vand.u32 4294901760, %v2974_v46 }
 0x1d9   :  { %1044 = vmatpush.msrb.mxu2 %v2862_v4 }
 0x1da   :  { %v1327_v21 = vsub.f32 %v2974_v46, %v1326_v16 }
 0x1db   :  { %1046 = vmatpush.msrb.mxu2 %v2869_v14 }
 0x1dc   :  { %v1328_v44 = vand.u32 4294901760, %v1327_v21 }
 0x1dd   :  { %1048 = vmatpush.msrb.mxu2 %v2880_v0 }
 0x1df   :  { %1050 = vmatpush.msrb.mxu2 %v2892_v24 }
 0x243   :  { %v735_v54 = vpop.f32.mrf.mxu0 }
 0x245   :  { %v762_v56 = vpop.f32.mrf.mxu1 }
 0x247   :  { %v705_v50 = vpop.f32.mrf.mxu3 }
 0x24f   :  { %v664_v51 = vpop.f32.mrf.mxu2  ;;  %v820_v60 = vpop.f32.mrf.mxu3 }
 0x250   :  { %v665_v52 = vadd.f32 %v2400_v49, %v664_v51 }
 0x252   :  { %v706_v53 = vadd.f32 %v705_v50, %v665_v52  ;;  %v1232_v50 = vld [vmem:[%s3367_s9 + $0x10] sm:$0xff] }
 0x254   :  { %v736_v55 = vadd.f32 %v735_v54, %v706_v53  ;;  %v3045_v54 = vand.u32 4294901760, %v1235_v27 }
 0x256   :  { %v763_v57 = vadd.f32 %v762_v56, %v736_v55 }
 0x257   :  { %v795_v58 = vpop.f32.mrf.mxu2 }
 0x258   :  { %v796_v59 = vadd.f32 %v795_v58, %v763_v57 }
 0x25a   :  { %v821_v61 = vadd.f32 %v820_v60, %v796_v59  ;;  %v3053_v59 = vand.u32 4294901760, %v1233_v47  ;;  %v1231_v60 = vld [vmem:[%s3367_s9 + $0x8] sm:$0xff] }
 0x25b   :  { %v3082_v34 = vand.u32 4294901760, %v1231_v60 }
 0x25c   :  { %v830_v62 = vsel %vm828_vm2, %v821_v61, 0  ;;  %v3080_v31 = vsub.f32 %v1233_v47, %v3053_v59 }
 0x25d   :  { %v853_v63 = vand.u32 4294901760, %v830_v62 }
 0x25f   :  { %v854_v1 = vsub.f32 %v830_v62, %v853_v63  ;;  %904 = vmatmul.f32.vlgmr.msrb.gmra.mxu1 %v853_v63  ;;  %v3061_v62 = vsub.f32 %v1235_v27, %v3045_v54 }
 0x260   :  { %1150 = vmatpush.msrb.mxu1 %v2853_v41 }
 0x261   :  { %936 = vmatmul.f32.vlgmr.msra.gmra.mxu2 %v854_v1  ;;  %v855_v2 = vand.u32 4294901760, %v854_v1 }
 0x262   :  { %1152 = vmatpush.msrb.mxu1 %v2862_v4  ;;  %1180 = vmatpush.msra.mxu2 %v1073_v10  ;;  %v2990_v10 = vsub.f32 %v1238_v35, %v2957_v38 }
 0x263   :  { %964 = vmatmul.f32.vlgmr.msra.gmra.mxu3 %v855_v2  ;;  %v856_v5 = vsub.f32 %v854_v1, %v855_v2 }
 0x264   :  { %1154 = vmatpush.msrb.mxu1 %v2869_v14  ;;  %1184 = vmatpush.msra.mxu2 %v1079_v18  ;;  %v824_v18 = vperm.slane %v2968_v42, 0 }
 0x265   :  { %v857_v6 = vand.u32 4294901760, %v856_v5  ;;  %1214 = vmatpush.msra.mxu3 %v2853_v41  ;;  %v1236_v41 = vld [vmem:[%s3367_s9 + $0x30] sm:$0xff]  ;;  %v825_v5 = vperm.slane %v2968_v42, 1 }
 0x266   :  { %1156 = vmatpush.msrb.mxu1 %v2880_v0  ;;  %1188 = vmatpush.msra.mxu2 %v1085_v23  ;;  %v1344_v23 = vand.u32 4294901760, %v2987_v9 }
 0x267   :  { %858 = vmatmul.f32.vlgmr.msrb.gmra.mxu0 %v857_v6  ;;  %1026 = vmatmul.f32.vlgmr.msra.gmra.mxu1 %v853_v63 }
 0x268   :  { %1216 = vmatpush.msra.mxu3 %v2862_v4  ;;  %1119 = vmatpush.msrb.mxu0 %v2860_v3  ;;  %v2977_v3 = vsub.f32 %v1241_v12, %v2942_v29  ;;  %v2980_v4 = vand.u32 4294901760, %v1237_v39  ;;  %v1345_v53 = vsub.f32 %v2987_v9, %v1344_v23  ;;  %v1368_v12 = vand.u32 4294901760, %v3061_v62 }
 0x269   :  { %1056 = vmatmul.f32.vlgmr.msrb.gmra.mxu2 %v857_v6  ;;  %1158 = vmatpush.msrb.mxu1 %v2892_v24 }
 0x26a   :  { %1192 = vmatpush.msra.mxu2 %v1091_v32  ;;  %1218 = vmatpush.msra.mxu3 %v2869_v14  ;;  %v2992_v14 = vand.u32 4294901760, %v1236_v41  ;;  %v1332_v17 = vand.u32 4294901760, %v2977_v3  ;;  %v1346_v11 = vand.u32 4294901760, %v1345_v53 }
 0x26b   :  { %1102 = vmatmul.f32.vlgmr.msrb.gmra.mxu3 %v853_v63  ;;  %1122 = vmatpush.msrb.mxu0 %v2872_v15  ;;  %v1320_v15 = vand.u32 4294901760, %v2971_v43 }
 0x26c   :  { %1196 = vmatpush.msra.mxu2 %v1097_v40  ;;  %1220 = vmatpush.msra.mxu3 %v2880_v0  ;;  %v1338_v0 = vand.u32 4294901760, %v2984_v8  ;;  %v1333_v22 = vsub.f32 %v2977_v3, %v1332_v17  ;;  %v3019_v26 = vsub.f32 %v1236_v41, %v2992_v14 }
 0x26d   :  { %1125 = vmatpush.msrb.mxu0 %v2883_v19  ;;  %v3002_v19 = vsub.f32 %v1237_v39, %v2980_v4  ;;  %v1321_v20 = vsub.f32 %v2971_v43, %v1320_v15 }
 0x26e   :  { %1222 = vmatpush.msra.mxu3 %v2892_v24  ;;  %1411 = vmatpush.msrb.mxu2 %v2971_v43  ;;  %v1339_v45 = vsub.f32 %v2984_v8, %v1338_v0  ;;  %v1334_v52 = vand.u32 4294901760, %v1333_v22  ;;  %v1362_v58 = vand.u32 4294901760, %v3019_v26  ;;  %v3094_v22 = vand.u32 4294901760, %v1230_v7 }
 0x26f   :  { %1000 = vmatmul.f32.vlgmr.msra.gmra.mxu0 %v853_v63  ;;  %1162 = vmatmul.f32.vlgmr.msrb.gmra.mxu1 %v855_v2  ;;  %v1322_v40 = vand.u32 4294901760, %v1321_v20  ;;  %v1356_v49 = vand.u32 4294901760, %v3002_v19 }
 0x270   :  { %1128 = vmatpush.msrb.mxu0 %v2896_v25  ;;  %1460 = vmatpush.msrb.mxu3 %v2938_v13  ;;  %v1350_v25 = vand.u32 4294901760, %v2990_v10  ;;  %v1340_v61 = vand.u32 4294901760, %v1339_v45  ;;  %v3103_v45 = vsub.f32 %v1231_v60, %v3082_v34  ;;  %v3115_v53 = vsub.f32 %v1230_v7, %v3094_v22 }
 0x271   :  { %1198 = vmatmul.f32.vlgmr.msra.gmra.mxu2 %v853_v63  ;;  %1323 = vmatpush.msra.mxu1 %v1322_v40  ;;  %v1357_v6 = vsub.f32 %v3002_v19, %v1356_v49  ;;  %v1369_v40 = vsub.f32 %v3061_v62, %v1368_v12 }
 0x272   :  { %1131 = vmatpush.msrb.mxu0 %v2901_v30  ;;  %1462 = vmatpush.msrb.mxu3 %v2940_v28  ;;  %v1234_v30 = vld [vmem:[%s3367_s9 + $0x20] sm:$0xff]  ;;  %v1351_v57 = vsub.f32 %v2990_v10, %v1350_v25  ;;  %v1398_v7 = vand.u32 4294901760, %v3115_v53 }
 0x273   :  { %1224 = vmatmul.f32.vlgmr.msra.gmra.mxu3 %v853_v63  ;;  %1414 = vmatpush.msrb.mxu2 %v2974_v46  ;;  %v3047_v55 = vand.u32 4294901760, %v1234_v30  ;;  %v1370_v60 = vand.u32 4294901760, %v1369_v40 }
 0x274   :  { %1280 = vmatpush.msra.mxu0 %v2938_v13  ;;  %1464 = vmatpush.msrb.mxu3 %v2942_v29  ;;  %v1352_v39 = vand.u32 4294901760, %v1351_v57 }
 0x275   :  { %1417 = vmatpush.msrb.mxu2 %v2977_v3  ;;  %1329 = vmatpush.msra.mxu1 %v1328_v44  ;;  %v3065_v63 = vsub.f32 %v1234_v30, %v3047_v55  ;;  %v1380_v44 = vand.u32 4294901760, %v3080_v31  ;;  %v1248_v3 = vld [vmem:[%s3369_s11 + $0x18] sm:$0xff] }
 0x276   :  { %1282 = vmatpush.msra.mxu0 %v2940_v28  ;;  %1466 = vmatpush.msrb.mxu3 %v2953_v36 }
 0x277   :  { %1134 = vmatmul.f32.vlgmr.msrb.gmra.mxu0 %v854_v1  ;;  %1420 = vmatpush.msrb.mxu2 %v2984_v8  ;;  %v3067_v1 = vand.u32 4294901760, %v1232_v50  ;;  %v1374_v20 = vand.u32 4294901760, %v3065_v63  ;;  %v1247_v8 = vld [vmem:[%s3369_s11 + $0x10] sm:$0xff] }
 0x278   :  { %1284 = vmatpush.msra.mxu0 %v2942_v29  ;;  %1468 = vmatpush.msrb.mxu3 %v2955_v37 }
 0x279   :  { %1423 = vmatpush.msrb.mxu2 %v2987_v9  ;;  %1335 = vmatpush.msra.mxu1 %v1334_v52  ;;  %v3092_v21 = vsub.f32 %v1232_v50, %v3067_v1 }
 0x27a   :  { %1286 = vmatpush.msra.mxu0 %v2953_v36  ;;  %1470 = vmatpush.msrb.mxu3 %v2957_v38 }
 0x27b   :  { %1426 = vmatpush.msrb.mxu2 %v2990_v10  ;;  %1341 = vmatpush.msra.mxu1 %v1340_v61  ;;  %v1386_v52 = vand.u32 4294901760, %v3092_v21  ;;  %v1381_v61 = vsub.f32 %v3080_v31, %v1380_v44  ;;  %v1613_v10 = vand.u32 4294901760, %v1247_v8 }
 0x27c   :  { %1288 = vmatpush.msra.mxu0 %v2955_v37  ;;  %1472 = vmatpush.msrb.mxu3 %v2980_v4 }
 0x27d   :  { %1429 = vmatpush.msrb.mxu2 %v3002_v19  ;;  %1347 = vmatpush.msra.mxu1 %v1346_v11  ;;  %v1382_v11 = vand.u32 4294901760, %v1381_v61 }
 0x27e   :  { %1290 = vmatpush.msra.mxu0 %v2957_v38  ;;  %1474 = vmatpush.msrb.mxu3 %v2992_v14 }
 0x27f   :  { %1432 = vmatpush.msrb.mxu2 %v3019_v26  ;;  %1353 = vmatpush.msra.mxu1 %v1352_v39 }
 0x280   :  { %1292 = vmatpush.msra.mxu0 %v2980_v4  ;;  %1476 = vmatpush.msrb.mxu3 %v3045_v54 }
 0x281   :  { %1435 = vmatpush.msrb.mxu2 %v3061_v62 }
 0x282   :  { %1294 = vmatpush.msra.mxu0 %v2992_v14  ;;  %1478 = vmatpush.msrb.mxu3 %v3047_v55 }
 0x283   :  { %1438 = vmatpush.msrb.mxu2 %v3065_v63 }
 0x284   :  { %1296 = vmatpush.msra.mxu0 %v3045_v54  ;;  %1480 = vmatpush.msrb.mxu3 %v3053_v59 }
 0x285   :  { %1441 = vmatpush.msrb.mxu2 %v3080_v31 }
 0x286   :  { %1298 = vmatpush.msra.mxu0 %v3047_v55  ;;  %1482 = vmatpush.msrb.mxu3 %v3067_v1 }
 0x287   :  { %1444 = vmatpush.msrb.mxu2 %v3092_v21 }
 0x288   :  { %1300 = vmatpush.msra.mxu0 %v3053_v59  ;;  %1484 = vmatpush.msrb.mxu3 %v3082_v34 }
 0x289   :  { %1447 = vmatpush.msrb.mxu2 %v3103_v45 }
 0x28a   :  { %1302 = vmatpush.msra.mxu0 %v3067_v1  ;;  %1486 = vmatpush.msrb.mxu3 %v3094_v22 }
 0x28b   :  { %1450 = vmatpush.msrb.mxu2 %v3115_v53 }
 0x28c   :  { %1304 = vmatpush.msra.mxu0 %v3082_v34 }
 0x28e   :  { %1306 = vmatpush.msra.mxu0 %v3094_v22 }
 0x290   :  { %1499 = vmatpush.msrb.mxu0 %v1320_v15 }
 0x292   :  { %1503 = vmatpush.msrb.mxu0 %v1326_v16  ;;  %v3199_v16 = vsub.f32 %v1247_v8, %v1613_v10 }
 0x294   :  { %1507 = vmatpush.msrb.mxu0 %v1332_v17 }
 0x296   :  { %1511 = vmatpush.msrb.mxu0 %v1338_v0  ;;  %v1245_v0 = vld [vmem:[%s3369_s11] sm:$0xff] }
 0x298   :  { %1515 = vmatpush.msrb.mxu0 %v1344_v23  ;;  %v1648_v23 = vand.u32 4294901760, %v3199_v16 }
 0x29a   :  { %1519 = vmatpush.msrb.mxu0 %v1350_v25 }
 0x29c   :  { %1523 = vmatpush.msrb.mxu0 %v1356_v49 }
 0x29e   :  { %1527 = vmatpush.msrb.mxu0 %v1362_v58 }
 0x2a0   :  { %1531 = vmatpush.msrb.mxu0 %v1368_v12 }
 0x2a2   :  { %1535 = vmatpush.msrb.mxu0 %v1374_v20 }
 0x2a4   :  { %1539 = vmatpush.msrb.mxu0 %v1380_v44 }
 0x2a6   :  { %1543 = vmatpush.msrb.mxu0 %v1386_v52 }
 0x2dc   :  { %v905_v24 = vpop.f32.mrf.mxu1 }
 0x2e4   :  { %v859_v32 = vpop.f32.mrf.mxu0  ;;  %v937_v33 = vpop.f32.mrf.mxu2 }
 0x2e5   :  { %v860_v48 = vadd.f32 %v859_v32, %v824_v18  ;;  %v1363_v18 = vsub.f32 %v3019_v26, %v1362_v58  ;;  %v1027_v30 = vpop.f32.mrf.mxu1  ;;  %v1617_v26 = vand.u32 4294901760, %v1245_v0 }
 0x2e6   :  { %v965_v51 = vpop.f32.mrf.mxu3 }
 0x2e7   :  { %v906_v56 = vadd.f32 %v905_v24, %v860_v48  ;;  %v1364_v50 = vand.u32 4294901760, %v1363_v18  ;;  %v1659_v58 = vsub.f32 %v1245_v0, %v1617_v26 }
 0x2e9   :  { %v938_v2 = vadd.f32 %v937_v33, %v906_v56  ;;  %v1358_v33 = vand.u32 4294901760, %v1357_v6  ;;  %v2404_v56 = vld [vmem:[%s3382_s22] sm:$0x3]  ;;  %v1387_v6 = vsub.f32 %v3092_v21, %v1386_v52 }
 0x2eb   :  { %v966_v35 = vadd.f32 %v965_v51, %v938_v2  ;;  %v1375_v51 = vsub.f32 %v3065_v63, %v1374_v20  ;;  %1359 = vmatpush.msra.mxu1 %v1358_v33  ;;  %v1392_v2 = vand.u32 4294901760, %v3103_v45  ;;  %v1388_v39 = vand.u32 4294901760, %v1387_v6 }
 0x2ec   :  { %v1001_v41 = vpop.f32.mrf.mxu0  ;;  %v1057_v42 = vpop.f32.mrf.mxu2  ;;  %v1660_v63 = vand.u32 4294901760, %v1659_v58 }
 0x2ed   :  { %v1002_v24 = vadd.f32 %v1001_v41, %v966_v35  ;;  %v1058_v27 = vadd.f32 %v1057_v42, %v825_v5  ;;  %1365 = vmatpush.msra.mxu1 %v1364_v50  ;;  %v1376_v5 = vand.u32 4294901760, %v1375_v51  ;;  %v1393_v35 = vsub.f32 %v3103_v45, %v1392_v2  ;;  %1547 = vmatpush.msrb.mxu0 %v1392_v2 }
 0x2ee   :  { %v1103_v32 = vpop.f32.mrf.mxu3  ;;  %v1399_v41 = vsub.f32 %v3115_v53, %v1398_v7  ;;  %v1661_v12 = vsub.f32 %v1659_v58, %v1660_v63 }
 0x2ef   :  { %v1028_v47 = vadd.f32 %v1027_v30, %v1002_v24  ;;  %v3105_v48 = vadd.f32 %v1103_v32, %v1058_v27  ;;  %1371 = vmatpush.msra.mxu1 %v1370_v60  ;;  %v1394_v42 = vand.u32 4294901760, %v1393_v35  ;;  %1551 = vmatpush.msrb.mxu0 %v1398_v7 }
 0x2f0   :  { %v1400_v18 = vand.u32 4294901760, %v1399_v41  ;;  %v1662_v31 = vand.u32 4294901760, %v1661_v12 }
 0x2f1   :  { %v3120_v57 = vsub.f32 %v2404_v56, %v1028_v47  ;;  %1377 = vmatpush.msra.mxu1 %v1376_v5 }
 0x2f3   :  { %1267 = vrot.lane.b32.xlu0 %v3120_v57, %s2434_s26  ;;  %1383 = vmatpush.msra.mxu1 %v1382_v11  ;;  %v1253_v11 = vld [vmem:[#allocation2 + $0x18] sm:$0xff] }
 0x2f4   :  { %v3213_v20 = vpop.f32.mrf.mxu0  ;;  %v3215_v21 = vpop.f32.mrf.mxu2  ;;  %v1803_v35 = vand.u32 4294901760, %v1253_v11 }
 0x2f5   :  { %1389 = vmatpush.msra.mxu1 %v1388_v39  ;;  %v1252_v39 = vld [vmem:[#allocation2 + $0x10] sm:$0xff] }
 0x2f6   :  { %v3220_v24 = vpop.f32.mrf.mxu3  ;;  %v1833_v41 = vsub.f32 %v1253_v11, %v1803_v35  ;;  %v1255_v11 = vld [vmem:[%s3373_s15] sm:$0xff] }
 0x2f7   :  { %1395 = vmatpush.msra.mxu1 %v1394_v42  ;;  %v1805_v42 = vand.u32 4294901760, %v1252_v39 }
 0x2f9   :  { %1401 = vmatpush.msra.mxu1 %v1400_v18  ;;  %v1251_v18 = vld [vmem:[#allocation2 + $0x8] sm:$0xff] }
 0x2fb   :  { %1560 = vmatpush.msrb.mxu1 %v2938_v13 }
 0x2fd   :  { %1562 = vmatpush.msrb.mxu1 %v2940_v28 }
 0x2ff   :  { %1564 = vmatpush.msrb.mxu1 %v2942_v29 }
 0x301   :  { %1566 = vmatpush.msrb.mxu1 %v2953_v36 }
 0x303   :  { %1568 = vmatpush.msrb.mxu1 %v2955_v37 }
 0x305   :  { %1570 = vmatpush.msrb.mxu1 %v2957_v38 }
 0x307   :  { %1572 = vmatpush.msrb.mxu1 %v2980_v4  ;;  %v1611_v4 = vand.u32 4294901760, %v1248_v3 }
 0x309   :  { %1574 = vmatpush.msrb.mxu1 %v2992_v14  ;;  %v3193_v9 = vsub.f32 %v1248_v3, %v1611_v4  ;;  %1612 = vmatpush.msra.mxu2 %v1611_v4  ;;  %v1246_v14 = vld [vmem:[%s3369_s11 + $0x8] sm:$0xff] }
 0x30a   :  { %v1615_v17 = vand.u32 4294901760, %v1246_v14 }
 0x30b   :  { %1576 = vmatpush.msrb.mxu1 %v3045_v54  ;;  %v1642_v15 = vand.u32 4294901760, %v3193_v9  ;;  %1614 = vmatpush.msra.mxu2 %v1613_v10  ;;  %v1649_v54 = vsub.f32 %v3199_v16, %v1648_v23 }
 0x30c   :  { %v1653_v25 = vsub.f32 %v1246_v14, %v1615_v17 }
 0x30d   :  { %1578 = vmatpush.msrb.mxu1 %v3047_v55  ;;  %v1643_v19 = vsub.f32 %v3193_v9, %v1642_v15  ;;  %1616 = vmatpush.msra.mxu2 %v1615_v17 }
 0x30e   :  { %v1654_v55 = vand.u32 4294901760, %v1653_v25 }
 0x30f   :  { %1580 = vmatpush.msrb.mxu1 %v3053_v59  ;;  %v1644_v49 = vand.u32 4294901760, %v1643_v19  ;;  %1618 = vmatpush.msra.mxu2 %v1617_v26  ;;  %v1650_v59 = vand.u32 4294901760, %v1649_v54 }
 0x310   :  { %v1655_v62 = vsub.f32 %v1653_v25, %v1654_v55 }
 0x311   :  { %1582 = vmatpush.msrb.mxu1 %v3067_v1  ;;  %1645 = vmatpush.msra.mxu3 %v1644_v49 }
 0x312   :  { %v1656_v1 = vand.u32 4294901760, %v1655_v62 }
 0x313   :  { %1584 = vmatpush.msrb.mxu1 %v3082_v34  ;;  %1651 = vmatpush.msra.mxu3 %v1650_v59  ;;  %v3211_v34 = vpop.f32.mrf.mxu1 }
 0x315   :  { %1586 = vmatpush.msrb.mxu1 %v3094_v22  ;;  %1657 = vmatpush.msra.mxu3 %v1656_v1  ;;  %v2401_v22 = vld [vmem:[%s3368_s10] ss:$0 sm:$0xff] }
 0x317   :  { %1663 = vmatpush.msra.mxu3 %v1662_v31 }
 0x365   :  { %v1268_v13 = vpop.permute.xlu0 %1267 }
 0x366   :  { %v1270_v28 = vmax.f32 %v3120_v57, %v1268_v13  ;;  %v1834_v13 = vand.u32 4294901760, %v1833_v41 }
 0x368   :  { %v1275_v29 = vsel %vm119_vm0, %v1270_v28, 0  ;;  %v1839_v28 = vsub.f32 %v1252_v39, %v1805_v42 }
 0x369   :  { %v1307_v36 = vand.u32 4294901760, %v1275_v29 }
 0x36b   :  { %v1308_v37 = vsub.f32 %v1275_v29, %v1307_v36  ;;  %1403 = vmatmul.f32.vlgmr.msra.gmra.mxu1 %v1307_v36  ;;  %v1807_v29 = vand.u32 4294901760, %v1251_v18 }
 0x36d   :  { %1453 = vmatmul.f32.vlgmr.msrb.gmra.mxu2 %v1308_v37  ;;  %v1309_v38 = vand.u32 4294901760, %v1308_v37 }
 0x36e   :  { %1683 = vmatpush.msrb.mxu2 %v3193_v9 }
 0x36f   :  { %1490 = vmatmul.f32.vlgmr.msrb.gmra.mxu3 %v1309_v38  ;;  %v1310_v43 = vsub.f32 %v1308_v37, %v1309_v38  ;;  %v1835_v37 = vsub.f32 %v1833_v41, %v1834_v13  ;;  %v1840_v38 = vand.u32 4294901760, %v1839_v28 }
 0x370   :  { %1686 = vmatpush.msrb.mxu2 %v3199_v16  ;;  %1712 = vmatpush.msrb.mxu3 %v1611_v4 }
 0x371   :  { %v1311_v46 = vand.u32 4294901760, %v1310_v43  ;;  %v1845_v43 = vsub.f32 %v1251_v18, %v1807_v29  ;;  %v1836_v3 = vand.u32 4294901760, %v1835_v37  ;;  %v3263_v18 = vand.u32 4294901760, %v1255_v11 }
 0x372   :  { %1689 = vmatpush.msrb.mxu2 %v1653_v25  ;;  %1714 = vmatpush.msrb.mxu3 %v1613_v10  ;;  %v2402_v25 = vld [vmem:[%s3370_s12] ss:$0 sm:$0xff] }
 0x373   :  { %1312 = vmatmul.f32.vlgmr.msra.gmra.mxu0 %v1311_v46  ;;  %1588 = vmatmul.f32.vlgmr.msrb.gmra.mxu1 %v1307_v36  ;;  %v1846_v8 = vand.u32 4294901760, %v1845_v43 }
 0x374   :  { %1692 = vmatpush.msrb.mxu2 %v1659_v58  ;;  %1716 = vmatpush.msrb.mxu3 %v1615_v17 }
 0x375   :  { %1804 = vmatpush.msra.mxu0 %v1803_v35  ;;  %1837 = vmatpush.msra.mxu1 %v1836_v3  ;;  %v1847_v14 = vsub.f32 %v1845_v43, %v1846_v8 }
 0x376   :  { %1718 = vmatpush.msrb.mxu3 %v1617_v26 }
 0x377   :  { %1806 = vmatpush.msra.mxu0 %v1805_v42  ;;  %v1848_v16 = vand.u32 4294901760, %v1847_v14 }
 0x379   :  { %1808 = vmatpush.msra.mxu0 %v1807_v29 }
 0x37b   :  { %1553 = vmatmul.f32.vlgmr.msrb.gmra.mxu0 %v1307_v36  ;;  %v1250_v36 = vld [vmem:[#allocation2] sm:$0xff] }
 0x37c   :  { %v1809_v46 = vand.u32 4294901760, %v1250_v36 }
 0x37e   :  { %v1851_v9 = vsub.f32 %v1250_v36, %v1809_v46  ;;  %1810 = vmatpush.msra.mxu0 %v1809_v46  ;;  %v2050_v36 = vsub.f32 %v1255_v11, %v3263_v18 }
 0x380   :  { %1933 = vmatpush.msrb.mxu0 %v1834_v13 }
 0x382   :  { %1937 = vmatpush.msrb.mxu0 %v1840_v38 }
 0x384   :  { %1941 = vmatpush.msrb.mxu0 %v1846_v8  ;;  %v1262_v8 = vld [vmem:[%s3373_s15 + $0x38] sm:$0xff] }
 0x385   :  { %v3281_v14 = vand.u32 4294901760, %v1262_v8 }
 0x3e8   :  { %v1404_v27 = vpop.f32.mrf.mxu1 }
 0x3f0   :  { %v1313_v30 = vpop.f32.mrf.mxu0  ;;  %v1454_v40 = vpop.f32.mrf.mxu2 }
 0x3f1   :  { %v1314_v32 = vadd.f32 %v2401_v22, %v1313_v30  ;;  %v1589_v52 = vpop.f32.mrf.mxu1 }
 0x3f2   :  { %v1491_v45 = vpop.f32.mrf.mxu3 }
 0x3f3   :  { %v1405_v33 = vadd.f32 %v1404_v27, %v1314_v32 }
 0x3f5   :  { %v1455_v44 = vadd.f32 %v1454_v40, %v1405_v33 }
 0x3f7   :  { %v1492_v47 = vadd.f32 %v1491_v45, %v1455_v44  ;;  %v1263_v44 = vld [vmem:[%s3373_s15 + $0x40] sm:$0xff] }
 0x3f8   :  { %v1554_v50 = vpop.f32.mrf.mxu0  ;;  %v3232_v45 = vand.u32 4294901760, %v1263_v44 }
 0x3f9   :  { %v1555_v51 = vadd.f32 %v1554_v50, %v1492_v47  ;;  %v1261_v47 = vld [vmem:[%s3373_s15 + $0x30] sm:$0xff] }
 0x3fa   :  { %v2026_v50 = vsub.f32 %v1263_v44, %v3232_v45 }
 0x3fb   :  { %v1590_v53 = vadd.f32 %v1589_v52, %v1555_v51  ;;  %v3238_v51 = vand.u32 4294901760, %v1261_v47  ;;  %v1259_v52 = vld [vmem:[%s3373_s15 + $0x20] sm:$0xff] }
 0x3fd   :  { %v1592_v56 = vmax.f32 %v1590_v53, 0.0  ;;  %v2027_v53 = vand.u32 4294901760, %v2026_v50 }
 0x3ff   :  { %v1597_v60 = vsel %vm442_vm1, %v1592_v56, 0  ;;  %v2032_v56 = vsub.f32 %v1261_v47, %v3238_v51  ;;  %v2403_v47 = vld [vmem:[%s3372_s14] ss:$0 sm:$0xff] }
 0x400   :  { %v1619_v61 = vand.u32 4294901760, %v1597_v60 }
 0x402   :  { %v1620_v2 = vsub.f32 %v1597_v60, %v1619_v61  ;;  %1665 = vmatmul.f32.vlgmr.msra.gmra.mxu3 %v1619_v61  ;;  %v3246_v60 = vand.u32 4294901760, %v1259_v52 }
 0x403   :  { %1772 = vmatpush.msra.mxu3 %v1611_v4  ;;  %v1841_v4 = vsub.f32 %v1839_v28, %v1840_v38 }
 0x404   :  { %v1621_v5 = vand.u32 4294901760, %v1620_v2 }
 0x405   :  { %1774 = vmatpush.msra.mxu3 %v1613_v10  ;;  %v1842_v10 = vand.u32 4294901760, %v1841_v4 }
 0x406   :  { %v1622_v6 = vsub.f32 %v1620_v2, %v1621_v5 }
 0x407   :  { %1776 = vmatpush.msra.mxu3 %v1615_v17  ;;  %1843 = vmatpush.msra.mxu1 %v1842_v10 }
 0x408   :  { %v1623_v7 = vand.u32 4294901760, %v1622_v6  ;;  %v2038_v6 = vsub.f32 %v1259_v52, %v3246_v60 }
 0x409   :  { %1778 = vmatpush.msra.mxu3 %v1617_v26  ;;  %1849 = vmatpush.msra.mxu1 %v1848_v16 }
 0x40a   :  { %1624 = vmatmul.f32.vlgmr.msra.gmra.mxu2 %v1623_v7  ;;  %1722 = vmatmul.f32.vlgmr.msrb.gmra.mxu3 %v1621_v5  ;;  %v2033_v5 = vand.u32 4294901760, %v2032_v56 }
 0x40b   :  { %1741 = vmatpush.msra.mxu2 %v1642_v15  ;;  %1904 = vmatpush.msrb.mxu3 %v1803_v35  ;;  %v1852_v15 = vand.u32 4294901760, %v1851_v9 }
 0x40c   :  { %v2034_v39 = vsub.f32 %v2032_v56, %v2033_v5 }
 0x40d   :  { %1745 = vmatpush.msra.mxu2 %v1648_v23  ;;  %1906 = vmatpush.msrb.mxu3 %v1805_v42  ;;  %v1853_v17 = vsub.f32 %v1851_v9, %v1852_v15 }
 0x40e   :  { %1945 = vmatpush.msrb.mxu0 %v1852_v15  ;;  %v2035_v13 = vand.u32 4294901760, %v2034_v39  ;;  %v1260_v15 = vld [vmem:[%s3373_s15 + $0x28] sm:$0xff] }
 0x40f   :  { %1749 = vmatpush.msra.mxu2 %v1654_v55  ;;  %1908 = vmatpush.msrb.mxu3 %v1807_v29  ;;  %v1854_v0 = vand.u32 4294901760, %v1853_v17 }
 0x411   :  { %1753 = vmatpush.msra.mxu2 %v1660_v63  ;;  %1910 = vmatpush.msrb.mxu3 %v1809_v46 }
 0x412   :  { %1695 = vmatmul.f32.vlgmr.msrb.gmra.mxu2 %v1620_v2  ;;  %1780 = vmatmul.f32.vlgmr.msra.gmra.mxu3 %v1619_v61  ;;  %v2028_v2 = vsub.f32 %v2026_v50, %v2027_v53 }
 0x413   :  { %1875 = vmatpush.msrb.mxu2 %v1833_v41  ;;  %1855 = vmatpush.msra.mxu1 %v1854_v0  ;;  %v2039_v41 = vand.u32 4294901760, %v2038_v6  ;;  %v3288_v0 = vand.u32 4294901760, %v1260_v15 }
 0x415   :  { %1878 = vmatpush.msrb.mxu2 %v1839_v28  ;;  %1964 = vmatpush.msrb.mxu1 %v1803_v35  ;;  %v2029_v35 = vand.u32 4294901760, %v2028_v2  ;;  %v2040_v28 = vsub.f32 %v2038_v6, %v2039_v41 }
 0x417   :  { %1881 = vmatpush.msrb.mxu2 %v1845_v43  ;;  %1966 = vmatpush.msrb.mxu1 %v1805_v42  ;;  %v2041_v37 = vand.u32 4294901760, %v2040_v28  ;;  %v1264_v43 = vld [vmem:[%s3373_s15 + $0x48] sm:$0xff]  ;;  %v1265_v28 = vld [vmem:[%s3374_s16] sm:$0x3] }
 0x418   :  { %2030 = vmatpush.msra.mxu3 %v2029_v35  ;;  %v3272_v3 = vand.u32 4294901760, %v1264_v43 }
 0x419   :  { %1884 = vmatpush.msrb.mxu2 %v1851_v9  ;;  %1968 = vmatpush.msrb.mxu1 %v1807_v29 }
 0x41a   :  { %1755 = vmatmul.f32.vlgmr.msra.gmra.mxu2 %v1619_v61  ;;  %v1257_v61 = vld [vmem:[%s3373_s15 + $0x10] sm:$0xff]  ;;  %2036 = vmatpush.msra.mxu3 %v2035_v13  ;;  %v3279_v10 = vsub.f32 %v1264_v43, %v3272_v3 }
 0x41b   :  { %1970 = vmatpush.msrb.mxu1 %v1809_v46  ;;  %1996 = vmatpush.msra.mxu2 %v3232_v45  ;;  %v3254_v7 = vand.u32 4294901760, %v1257_v61  ;;  %v2051_v46 = vand.u32 4294901760, %v2050_v36 }
 0x41c   :  { %2042 = vmatpush.msra.mxu3 %v2041_v37  ;;  %v2225_v17 = vand.u32 4294901760, %v3279_v10 }
 0x41d   :  { %1998 = vmatpush.msra.mxu2 %v3238_v51  ;;  %v2044_v42 = vsub.f32 %v1257_v61, %v3254_v7  ;;  %v2052_v9 = vsub.f32 %v2050_v36, %v2051_v46 }
 0x41f   :  { %2000 = vmatpush.msra.mxu2 %v3246_v60  ;;  %v2045_v29 = vand.u32 4294901760, %v2044_v42  ;;  %v2053_v16 = vand.u32 4294901760, %v2052_v9 }
 0x421   :  { %2002 = vmatpush.msra.mxu2 %v3254_v7  ;;  %v2046_v38 = vsub.f32 %v2044_v42, %v2045_v29 }
 0x423   :  { %2004 = vmatpush.msra.mxu2 %v3263_v18  ;;  %v2047_v4 = vand.u32 4294901760, %v2046_v38 }
 0x425   :  { %2048 = vmatpush.msra.mxu3 %v2047_v4 }
 0x427   :  { %2054 = vmatpush.msra.mxu3 %v2053_v16 }
 0x485   :  { %v1666_v19 = vpop.f32.mrf.mxu3 }
 0x48d   :  { %v1625_v23 = vpop.f32.mrf.mxu2  ;;  %v1723_v49 = vpop.f32.mrf.mxu3 }
 0x48e   :  { %v1626_v26 = vadd.f32 %v2402_v25, %v1625_v23  ;;  %v1258_v23 = vld [vmem:[%s3373_s15 + $0x18] sm:$0xff]  ;;  %v2226_v25 = vsub.f32 %v3279_v10, %v2225_v17 }
 0x490   :  { %v1667_v55 = vadd.f32 %v1666_v19, %v1626_v26  ;;  %v3291_v19 = vsub.f32 %v1262_v8, %v3281_v14  ;;  %v1978_v8 = vperm.slane %v1265_v28, 1 }
 0x492   :  { %v2231_v26 = vand.u32 4294901760, %v3291_v19 }
 0x495   :  { %v1696_v54 = vpop.f32.mrf.mxu2  ;;  %v1781_v1 = vpop.f32.mrf.mxu3 }
 0x496   :  { %v1697_v58 = vadd.f32 %v1696_v54, %v1667_v55  ;;  %v3302_v54 = vsub.f32 %v1260_v15, %v3288_v0  ;;  %v1256_v55 = vld [vmem:[%s3373_s15 + $0x8] sm:$0xff] }
 0x498   :  { %v1724_v59 = vadd.f32 %v1723_v49, %v1697_v58  ;;  %v3299_v49 = vand.u32 4294901760, %v1258_v23  ;;  %v2227_v58 = vand.u32 4294901760, %v2226_v25 }
 0x49d   :  { %v1756_v62 = vpop.f32.mrf.mxu2 }
 0x49e   :  { %v1757_v63 = vadd.f32 %v1756_v62, %v1724_v59  ;;  %v2232_v59 = vsub.f32 %v3291_v19, %v2231_v26  ;;  %v2237_v62 = vand.u32 4294901760, %v3302_v54 }
 0x4a0   :  { %v1782_v12 = vadd.f32 %v1781_v1, %v1757_v63  ;;  %v3311_v63 = vand.u32 4294901760, %v1256_v55  ;;  %v3315_v1 = vsub.f32 %v1258_v23, %v3299_v49 }
 0x4a2   :  { %v1784_v31 = vmax.f32 %v1782_v12, 0.0  ;;  %v2233_v12 = vand.u32 4294901760, %v2232_v59 }
 0x4a4   :  { %v1789_v22 = vsel %vm442_vm1, %v1784_v31, 0  ;;  %v2238_v31 = vsub.f32 %v3302_v54, %v2237_v62 }
 0x4a5   :  { %v1811_v27 = vand.u32 4294901760, %v1789_v22 }
 0x4a7   :  { %v1812_v30 = vsub.f32 %v1789_v22, %v1811_v27  ;;  %1857 = vmatmul.f32.vlgmr.msra.gmra.mxu1 %v1811_v27  ;;  %v2248_v22 = vsub.f32 %v1256_v55, %v3311_v63 }
 0x4a8   :  { %2104 = vmatpush.msra.mxu1 %v3232_v45 }
 0x4a9   :  { %1887 = vmatmul.f32.vlgmr.msrb.gmra.mxu2 %v1812_v30  ;;  %v1813_v32 = vand.u32 4294901760, %v1812_v30 }
 0x4aa   :  { %2106 = vmatpush.msra.mxu1 %v3238_v51  ;;  %2134 = vmatpush.msrb.mxu2 %v2027_v53 }
 0x4ab   :  { %1914 = vmatmul.f32.vlgmr.msrb.gmra.mxu3 %v1813_v32  ;;  %v1814_v33 = vsub.f32 %v1812_v30, %v1813_v32  ;;  %v2239_v30 = vand.u32 4294901760, %v2238_v31  ;;  %v2249_v32 = vand.u32 4294901760, %v2248_v22 }
 0x4ac   :  { %2108 = vmatpush.msra.mxu1 %v3246_v60  ;;  %2138 = vmatpush.msrb.mxu2 %v2033_v5 }
 0x4ad   :  { %v1815_v40 = vand.u32 4294901760, %v1814_v33  ;;  %2168 = vmatpush.msrb.mxu3 %v3232_v45 }
 0x4ae   :  { %2110 = vmatpush.msra.mxu1 %v3254_v7  ;;  %2142 = vmatpush.msrb.mxu2 %v2039_v41 }
 0x4af   :  { %1816 = vmatmul.f32.vlgmr.msra.gmra.mxu0 %v1815_v40  ;;  %1972 = vmatmul.f32.vlgmr.msrb.gmra.mxu1 %v1811_v27  ;;  %v2250_v40 = vsub.f32 %v2248_v22, %v2249_v32 }
 0x4b0   :  { %2073 = vmatpush.msra.mxu0 %v2026_v50  ;;  %2112 = vmatpush.msra.mxu1 %v3263_v18 }
 0x4b1   :  { %2146 = vmatpush.msrb.mxu2 %v2045_v29  ;;  %2170 = vmatpush.msrb.mxu3 %v3238_v51  ;;  %v2251_v45 = vand.u32 4294901760, %v2250_v40 }
 0x4b2   :  { %2076 = vmatpush.msra.mxu0 %v2032_v56  ;;  %2228 = vmatpush.msrb.mxu1 %v2227_v58 }
 0x4b3   :  { %2150 = vmatpush.msrb.mxu2 %v2051_v46  ;;  %2172 = vmatpush.msrb.mxu3 %v3246_v60 }
 0x4b4   :  { %2079 = vmatpush.msra.mxu0 %v2038_v6  ;;  %2234 = vmatpush.msrb.mxu1 %v2233_v12 }
 0x4b5   :  { %2174 = vmatpush.msrb.mxu3 %v3254_v7 }
 0x4b6   :  { %2082 = vmatpush.msra.mxu0 %v2044_v42  ;;  %2240 = vmatpush.msrb.mxu1 %v2239_v30 }
 0x4b7   :  { %1947 = vmatmul.f32.vlgmr.msrb.gmra.mxu0 %v1811_v27  ;;  %v2243_v27 = vand.u32 4294901760, %v3315_v1  ;;  %2176 = vmatpush.msrb.mxu3 %v3263_v18 }
 0x4b8   :  { %2085 = vmatpush.msra.mxu0 %v2050_v36  ;;  %v1977_v36 = vperm.slane %v1265_v28, 0 }
 0x4b9   :  { %v2244_v33 = vsub.f32 %v3315_v1, %v2243_v27 }
 0x4ba   :  { %2194 = vmatpush.msrb.mxu0 %v3272_v3 }
 0x4bb   :  { %v2245_v44 = vand.u32 4294901760, %v2244_v33 }
 0x4bc   :  { %2196 = vmatpush.msrb.mxu0 %v3281_v14 }
 0x4bd   :  { %2246 = vmatpush.msrb.mxu1 %v2245_v44 }
 0x4be   :  { %2198 = vmatpush.msrb.mxu0 %v3288_v0 }
 0x4bf   :  { %2252 = vmatpush.msrb.mxu1 %v2251_v45 }
 0x4c0   :  { %2200 = vmatpush.msrb.mxu0 %v3299_v49 }
 0x4c2   :  { %2202 = vmatpush.msrb.mxu0 %v3311_v63 }
 0x524   :  { %v1858_v50 = vpop.f32.mrf.mxu1 }
 0x52c   :  { %v1817_v51 = vpop.f32.mrf.mxu0  ;;  %v1888_v56 = vpop.f32.mrf.mxu2 }
 0x52d   :  { %v1818_v52 = vadd.f32 %v2403_v47, %v1817_v51  ;;  %v1973_v7 = vpop.f32.mrf.mxu1 }
 0x52e   :  { %v1915_v61 = vpop.f32.mrf.mxu3 }
 0x52f   :  { %v1859_v53 = vadd.f32 %v1858_v50, %v1818_v52 }
 0x531   :  { %v1889_v60 = vadd.f32 %v1888_v56, %v1859_v53 }
 0x533   :  { %v1916_v2 = vadd.f32 %v1915_v61, %v1889_v60 }
 0x534   :  { %v1948_v5 = vpop.f32.mrf.mxu0 }
 0x535   :  { %v1949_v6 = vadd.f32 %v1948_v5, %v1916_v2 }
 0x537   :  { %v1974_v11 = vadd.f32 %v1973_v7, %v1949_v6 }
 0x539   :  { %v1982_v35 = vsel %vm828_vm2, %v1974_v11, 0 }
 0x53a   :  { %v2005_v39 = vand.u32 4294901760, %v1982_v35 }
 0x53c   :  { %v2006_v41 = vsub.f32 %v1982_v35, %v2005_v39  ;;  %2056 = vmatmul.f32.vlgmr.msra.gmra.mxu3 %v2005_v39 }
 0x53d   :  { %2302 = vmatpush.msra.mxu3 %v3272_v3 }
 0x53e   :  { %2088 = vmatmul.f32.vlgmr.msra.gmra.mxu0 %v2006_v41  ;;  %v2007_v42 = vand.u32 4294901760, %v2006_v41 }
 0x53f   :  { %2304 = vmatpush.msra.mxu3 %v3281_v14  ;;  %2332 = vmatpush.msra.mxu0 %v2225_v17  ;;  %v1136_v17 = vadd.f32 %v3213_v20, %v3105_v48 }
 0x540   :  { %2116 = vmatmul.f32.vlgmr.msra.gmra.mxu1 %v2007_v42  ;;  %v2008_v18 = vsub.f32 %v2006_v41, %v2007_v42 }
 0x541   :  { %2306 = vmatpush.msra.mxu3 %v3288_v0  ;;  %2336 = vmatpush.msra.mxu0 %v2231_v26  ;;  %v1164_v26 = vadd.f32 %v3211_v34, %v1136_v17 }
 0x542   :  { %v2009_v13 = vand.u32 4294901760, %v2008_v18  ;;  %2366 = vmatpush.msra.mxu1 %v3272_v3 }
 0x543   :  { %2308 = vmatpush.msra.mxu3 %v3299_v49  ;;  %2340 = vmatpush.msra.mxu0 %v2237_v62  ;;  %v1200_v59 = vadd.f32 %v3215_v21, %v1164_v26 }
 0x544   :  { %2010 = vmatmul.f32.vlgmr.msra.gmra.mxu2 %v2009_v13  ;;  %2178 = vmatmul.f32.vlgmr.msrb.gmra.mxu3 %v2005_v39 }
 0x545   :  { %2368 = vmatpush.msra.mxu1 %v3281_v14  ;;  %2271 = vmatpush.msra.mxu2 %v3279_v10 }
 0x546   :  { %2208 = vmatmul.f32.vlgmr.msrb.gmra.mxu0 %v2009_v13  ;;  %2310 = vmatpush.msra.mxu3 %v3311_v63 }
 0x547   :  { %2344 = vmatpush.msra.mxu0 %v2243_v27  ;;  %2370 = vmatpush.msra.mxu1 %v3288_v0 }
 0x548   :  { %2254 = vmatmul.f32.vlgmr.msrb.gmra.mxu1 %v2005_v39  ;;  %2274 = vmatpush.msra.mxu2 %v3291_v19 }
 0x549   :  { %2348 = vmatpush.msra.mxu0 %v2249_v32  ;;  %2372 = vmatpush.msra.mxu1 %v3299_v49 }
 0x54a   :  { %2277 = vmatpush.msra.mxu2 %v3302_v54 }
 0x54b   :  { %2374 = vmatpush.msra.mxu1 %v3311_v63 }
 0x54c   :  { %2152 = vmatmul.f32.vlgmr.msrb.gmra.mxu2 %v2005_v39  ;;  %2314 = vmatmul.f32.vlgmr.msra.gmra.mxu3 %v2007_v42 }
 0x54d   :  { %2280 = vmatpush.msra.mxu2 %v3315_v1  ;;  %v1226_v1 = vadd.f32 %v3220_v24, %v1200_v59 }
 0x54e   :  { %2350 = vmatmul.f32.vlgmr.msra.gmra.mxu0 %v2005_v39 }
 0x54f   :  { %2283 = vmatpush.msra.mxu2 %v2248_v22 }
 0x550   :  { %2376 = vmatmul.f32.vlgmr.msra.gmra.mxu1 %v2005_v39 }
 0x554   :  { %2286 = vmatmul.f32.vlgmr.msra.gmra.mxu2 %v2006_v41 }
 0x5bb   :  { %v2089_v29 = vpop.f32.mrf.mxu0 }
 0x5bd   :  { %v2117_v46 = vpop.f32.mrf.mxu1 }
 0x5bf   :  { %v2057_v37 = vpop.f32.mrf.mxu3 }
 0x5c3   :  { %v2209_v9 = vpop.f32.mrf.mxu0 }
 0x5c4   :  { %v2210_v0 = vadd.f32 %v2209_v9, %v1978_v8 }
 0x5c5   :  { %v2255_v23 = vpop.f32.mrf.mxu1 }
 0x5c6   :  { %v2256_v49 = vadd.f32 %v2255_v23, %v2210_v0 }
 0x5c7   :  { %v2011_v38 = vpop.f32.mrf.mxu2  ;;  %v2179_v14 = vpop.f32.mrf.mxu3 }
 0x5c8   :  { %v2012_v43 = vadd.f32 %v2011_v38, %v1977_v36 }
 0x5ca   :  { %v2058_v3 = vadd.f32 %v2057_v37, %v2012_v43 }
 0x5cb   :  { %v2351_v63 = vpop.f32.mrf.mxu0 }
 0x5cc   :  { %v2090_v4 = vadd.f32 %v2089_v29, %v2058_v3 }
 0x5cd   :  { %v2377_v20 = vpop.f32.mrf.mxu1 }
 0x5ce   :  { %v2118_v10 = vadd.f32 %v2117_v46, %v2090_v4 }
 0x5cf   :  { %v2153_v15 = vpop.f32.mrf.mxu2  ;;  %v2315_v58 = vpop.f32.mrf.mxu3 }
 0x5d0   :  { %v2154_v16 = vadd.f32 %v2153_v15, %v2118_v10 }
 0x5d2   :  { %v2180_v19 = vadd.f32 %v2179_v14, %v2154_v16 }
 0x5d4   :  { %v2380_v25 = vsub.f32 %v3120_v57, %v2180_v19 }
 0x5d6   :  { %2382 = vst [vmem:[%s3375_s17] sm:$0x3] %v2380_v25 }
 0x5d7   :  { %v2287_v54 = vpop.f32.mrf.mxu2 }
 0x5d8   :  { %v2288_v55 = vadd.f32 %v2287_v54, %v2256_v49 }
 0x5da   :  { %v2316_v62 = vadd.f32 %v2315_v58, %v2288_v55 }
 0x5dc   :  { %v2352_v48 = vadd.f32 %v2351_v63, %v2316_v62 }
 0x5de   :  { %v2378_v12 = vadd.f32 %v2377_v20, %v2352_v48 }
 0x5e0   :  { %v2381_v57 = vadd.f32 %v2378_v12, %v1226_v1 }
 0x5e2   :  { %2384 = vst.msk [vmem:[%s3376_s18] sm:$0x3] %vm2383_vm3, %v2381_v57 }
 0x5e3   :  { %2393 = vsyncpa [#allocation3], 1 }

</bundles_post_ra>
